<compile_context>
chip_gen: v6e
topology: v6e:2x2x1
jax: 0.10.0
libtpu: 0.0.40
codegen_flags: <defaults>
</compile_context>

<pallas_src>
import functools

import jax
import jax.numpy as jnp
from jax.experimental import pallas as pl
from jax.experimental.pallas import tpu as pltpu


def _round_up(x, m):
    return ((x + m - 1) // m) * m


def _vmem_limit_bytes():
    """~75% of physical VMEM, capped at 100 MiB (v5e/v6e: 96 MiB, v7x: 48 MiB)."""
    cap = 64 * 1024 * 1024                      # safe default (v7x-sized)
    try:
        cap = int(pltpu.get_tpu_info().vmem_capacity_bytes)
    except Exception:
        pass
    return min(int(cap * 0.75), 100 * 1024 * 1024)


def _pick_tiles(n):
    """(tile_m, tile_k) for the (A+I) operand: tall rows, long reduction."""
    if n <= 256:
        return 256, 256
    tile_k = min(2048, _round_up(n, 512))       # 512 x 2048 int8 block = 1 MiB
    return 512, tile_k


# --------------------------------------------------------------------------
# Kernel 1: GCN layer 1, fused with layer 2's input pre-scaling.
#   acc  = (A+I) @ (dinv * X)            (int8 adjacency -> bf16, f32 acc)
#   out  = dinv * ( relu((dinv*acc) @ W1 + b1) @ W2 )        [tile_m, 64]
# grid = (row blocks "parallel", reduction blocks "arbitrary")
# --------------------------------------------------------------------------
def _gcn1_kernel(a_ref, x_ref, dinv_ref, w1_ref, b1_ref, w2_ref, out_ref,
                 acc_ref, *, x_resident, tile_k):
    k = pl.program_id(1)

    @pl.when(k == 0)
    def _():
        acc_ref[...] = jnp.zeros_like(acc_ref)

    if x_resident:
        start = pl.multiple_of(k * tile_k, tile_k)
        x_blk = x_ref[pl.ds(start, tile_k), :]          # VMEM-resident slice
    else:
        x_blk = x_ref[...]                               # streamed block

    # int8 0/1 adjacency -> bf16 on the VPU (hidden under the HBM stream),
    # bf16 x bf16 MXU matmul with f32 accumulation.
    acc_ref[...] += jnp.dot(a_ref[...].astype(jnp.bfloat16), x_blk,
                            preferred_element_type=jnp.float32)

    @pl.when(k == pl.num_programs(1) - 1)
    def _():
        ax = acc_ref[...] * dinv_ref[...]                # = A_hat @ X   (f32)
        h1 = jnp.dot(ax, w1_ref[...],
                     preferred_element_type=jnp.float32) + b1_ref[...]
        h1 = jnp.maximum(h1, 0.0)                        # relu, f32
        hw = jnp.dot(h1, w2_ref[...],
                     preferred_element_type=jnp.float32)  # H1 @ W2, f32
        # Fold layer 2's input row-scaling in here so layer 2 streams the
        # 0/1 adjacency too:   out = dinv * (H1 @ W2)
        out_ref[...] = (hw * dinv_ref[...]).astype(out_ref.dtype)


# --------------------------------------------------------------------------
# Kernel 2: GCN layer 2 (input Z = dinv * (H1 @ W2) already prepared).
#   out = relu( dinv * ((A+I) @ Z) + b2 )                     [tile_m, 64]
# --------------------------------------------------------------------------
def _gcn2_kernel(a_ref, z_ref, dinv_ref, b2_ref, out_ref, acc_ref,
                 *, z_resident, tile_k):
    k = pl.program_id(1)

    @pl.when(k == 0)
    def _():
        acc_ref[...] = jnp.zeros_like(acc_ref)

    if z_resident:
        start = pl.multiple_of(k * tile_k, tile_k)
        z_blk = z_ref[pl.ds(start, tile_k), :]
    else:
        z_blk = z_ref[...]

    acc_ref[...] += jnp.dot(a_ref[...].astype(jnp.bfloat16), z_blk,
                            preferred_element_type=jnp.float32)

    @pl.when(k == pl.num_programs(1) - 1)
    def _():
        h2 = acc_ref[...] * dinv_ref[...] + b2_ref[...]
        out_ref[...] = jnp.maximum(h2, 0.0).astype(out_ref.dtype)


# --------------------------------------------------------------------------
# Kernel 3: unnormalized pooling  g_sum = P01 @ H2   (0/1 one-hot, bf16 x bf16)
# --------------------------------------------------------------------------
def _pool_kernel(p_ref, h2_ref, out_ref, acc_ref):
    k = pl.program_id(0)

    @pl.when(k == 0)
    def _():
        acc_ref[...] = jnp.zeros_like(acc_ref)

    acc_ref[...] += jnp.dot(p_ref[...], h2_ref[...],
                            preferred_element_type=jnp.float32)

    @pl.when(k == pl.num_programs(0) - 1)
    def _():
        out_ref[...] = acc_ref[...]


def url_gnn_forward(node_ids, edge_index, batch, params, num_graphs):
    """Glue (embedding gather, int8 (A+I), dinv, one-hot) + Pallas GCN/pool
    kernels; mean normalization, FC and sigmoid on the tiny [G,64] in glue."""
    emb, w1, b1, w2, b2, wfc, bfc = (params[k] for k in
                                     ("emb", "w1", "b1", "w2", "b2", "wfc", "bfc"))
    n = node_ids.shape[0]
    e_dim = emb.shape[1]          # 64
    hid1 = w1.shape[1]            # 128
    hid2 = w2.shape[1]            # 64

    tile_m, tile_k = _pick_tiles(n)
    n_pad = _round_up(n, tile_k)             # divisible by tile_m and tile_k
    n_blk_m = n_pad // tile_m
    n_blk_k = n_pad // tile_k
    g_pad = _round_up(num_graphs, 16)

    vmem_limit = _vmem_limit_bytes()
    # Keep X / Z VMEM-resident when (double-buffered) they fit with headroom
    # for the double-buffered A block, weights, accumulator and output.
    feat_bytes = n_pad * max(e_dim, hid2) * 2            # bf16 resident operand
    a_block_bytes = tile_m * tile_k                      # int8 A block
    feat_resident = (2 * feat_bytes + 2 * a_block_bytes + (4 << 20)
                     <= int(0.7 * vmem_limit))
    x_stream_reads = 1 if feat_resident else n_blk_m

    # ---- glue: 0/1 adjacency with self loops; dinv stays f32 ----------------
    src, dst = edge_index[0], edge_index[1]
    self_idx = jnp.arange(n, dtype=edge_index.dtype)
    src = jnp.concatenate([src, self_idx])
    dst = jnp.concatenate([dst, self_idx])
    adj = jnp.zeros((n_pad, n_pad), jnp.int32).at[dst, src].add(1)
    deg = jnp.sum(adj, axis=1).astype(jnp.float32)
    dinv = jnp.where(deg > 0, jax.lax.rsqrt(deg), 0.0)   # [n_pad] f32
    dinv_col = dinv[:, None]                              # [n_pad, 1] f32
    a_i8 = adj.astype(jnp.int8)        # A_hat = diag(dinv) @ (A+I) @ diag(dinv)

    # ---- glue: embedding gather, pre-scaled by dinv, bf16 -------------------
    x = jnp.zeros((n_pad, e_dim), jnp.float32).at[:n].set(emb[node_ids])
    x_bf = (x * dinv_col).astype(jnp.bfloat16)

    # ---- glue: unnormalized 0/1 one-hot pooling matrix (bf16) ---------------
    batch_p = jnp.full((n_pad,), g_pad, jnp.int32).at[:n].set(
        batch.astype(jnp.int32))                         # padded nodes -> no graph
    onehot = (batch_p[None, :] ==
              jnp.arange(g_pad, dtype=jnp.int32)[:, None]).astype(jnp.bfloat16)
    counts = jnp.maximum(
        jnp.zeros((num_graphs,), jnp.float32).at[batch].add(1.0), 1.0)

    par_arb = ("parallel", "arbitrary")

    if feat_resident:
        x_spec = pl.BlockSpec((n_pad, e_dim), lambda i, k: (0, 0))
        z_spec = pl.BlockSpec((n_pad, hid2), lambda i, k: (0, 0))
    else:
        x_spec = pl.BlockSpec((tile_k, e_dim), lambda i, k: (k, 0))
        z_spec = pl.BlockSpec((tile_k, hid2), lambda i, k: (k, 0))

    weight_bytes = (e_dim * hid1 + hid1 + hid1 * hid2 + hid2) * 4

    # ---- layer 1 (fused with layer-2 input pre-scaling) ----------------------
    z = pl.pallas_call(
        functools.partial(_gcn1_kernel, x_resident=feat_resident, tile_k=tile_k),
        out_shape=jax.ShapeDtypeStruct((n_pad, hid2), jnp.bfloat16),
        grid_spec=pltpu.PrefetchScalarGridSpec(
            num_scalar_prefetch=0,
            grid=(n_blk_m, n_blk_k),
            in_specs=[
                pl.BlockSpec((tile_m, tile_k), lambda i, k: (i, k)),  # (A+I) int8
                x_spec,                                               # dinv*X bf16
                pl.BlockSpec((tile_m, 1), lambda i, k: (i, 0)),       # dinv rows
                pl.BlockSpec((e_dim, hid1), lambda i, k: (0, 0)),     # W1 f32
                pl.BlockSpec((1, hid1), lambda i, k: (0, 0)),         # b1 f32
                pl.BlockSpec((hid1, hid2), lambda i, k: (0, 0)),      # W2 f32
            ],
            out_specs=pl.BlockSpec((tile_m, hid2), lambda i, k: (i, 0)),
            scratch_shapes=[pltpu.VMEM((tile_m, e_dim), jnp.float32)]),
        compiler_params=pltpu.CompilerParams(
            dimension_semantics=par_arb, vmem_limit_bytes=vmem_limit),
        cost_estimate=pl.CostEstimate(
            flops=2 * n_pad * n_pad * e_dim
            + 2 * n_pad * e_dim * hid1 + 2 * n_pad * hid1 * hid2,
            transcendentals=0,
            bytes_accessed=n_pad * n_pad                         # int8 A
            + x_stream_reads * n_pad * e_dim * 2                 # bf16 X
            + n_pad * hid2 * 2 + n_pad * 4 + weight_bytes),
    )(a_i8, x_bf, dinv_col, w1, b1, w2)

    # ---- layer 2 --------------------------------------------------------------
    h2 = pl.pallas_call(
        functools.partial(_gcn2_kernel, z_resident=feat_resident, tile_k=tile_k),
        out_shape=jax.ShapeDtypeStruct((n_pad, hid2), jnp.bfloat16),
        grid_spec=pltpu.PrefetchScalarGridSpec(
            num_scalar_prefetch=0,
            grid=(n_blk_m, n_blk_k),
            in_specs=[
                pl.BlockSpec((tile_m, tile_k), lambda i, k: (i, k)),  # (A+I) int8
                z_spec,                                               # dinv*(H1@W2)
                pl.BlockSpec((tile_m, 1), lambda i, k: (i, 0)),       # dinv rows
                pl.BlockSpec((1, hid2), lambda i, k: (0, 0)),         # b2 f32
            ],
            out_specs=pl.BlockSpec((tile_m, hid2), lambda i, k: (i, 0)),
            scratch_shapes=[pltpu.VMEM((tile_m, hid2), jnp.float32)]),
        compiler_params=pltpu.CompilerParams(
            dimension_semantics=par_arb, vmem_limit_bytes=vmem_limit),
        cost_estimate=pl.CostEstimate(
            flops=2 * n_pad * n_pad * hid2,
            transcendentals=0,
            bytes_accessed=n_pad * n_pad
            + x_stream_reads * n_pad * hid2 * 2
            + n_pad * hid2 * 2 + n_pad * 4 + hid2 * 4),
    )(a_i8, z, dinv_col, b2)

    # ---- unnormalized pool (lane-dense [g_pad, 64] f32 sums) ------------------
    g_sum = pl.pallas_call(
        _pool_kernel,
        out_shape=jax.ShapeDtypeStruct((g_pad, hid2), jnp.float32),
        grid_spec=pltpu.PrefetchScalarGridSpec(
            num_scalar_prefetch=0,
            grid=(n_blk_k,),
            in_specs=[
                pl.BlockSpec((g_pad, tile_k), lambda k: (0, k)),      # 0/1 bf16
                pl.BlockSpec((tile_k, hid2), lambda k: (k, 0)),       # H2 bf16
            ],
            out_specs=pl.BlockSpec((g_pad, hid2), lambda k: (0, 0)),
            scratch_shapes=[pltpu.VMEM((g_pad, hid2), jnp.float32)]),
        compiler_params=pltpu.CompilerParams(
            dimension_semantics=("arbitrary",), vmem_limit_bytes=vmem_limit),
        cost_estimate=pl.CostEstimate(
            flops=2 * g_pad * n_pad * hid2,
            transcendentals=0,
            bytes_accessed=g_pad * n_pad * 2 + n_pad * hid2 * 2
            + g_pad * hid2 * 4),
    )(onehot, h2)

    # ---- mean normalization + tiny FC + sigmoid in glue (O(G*64)) -------------
    g_mean = g_sum[:num_graphs] / counts[:, None]         # [G, 64] f32
    logits = g_mean @ wfc + bfc                            # [G, 1]
    return jnp.squeeze(jax.nn.sigmoid(logits))             # [G]


def init_params(key, vocab_size, embed_dim=64):
    ks = jax.random.split(key, 5)
    return {
        "emb": jax.random.normal(ks[0], (vocab_size, embed_dim), jnp.float32) * 0.1,
        "w1":  jax.random.normal(ks[1], (embed_dim, 128), jnp.float32) * 0.1,
        "b1":  jnp.zeros((1, 128), jnp.float32),
        "w2":  jax.random.normal(ks[2], (128, 64), jnp.float32) * 0.1,
        "b2":  jnp.zeros((1, 64), jnp.float32),
        "wfc": jax.random.normal(ks[3], (64, 1), jnp.float32) * 0.1,
        "bfc": jnp.zeros((1, 1), jnp.float32),
    }


if __name__ == "__main__":
    key = jax.random.PRNGKey(0)
    vocab_size = 50
    embed_dim = 64
    num_nodes = 16      # N (nodes across all graphs in the batch)
    num_graphs = 2      # G
    num_edges = 24

    k_ids, k_edges, k_params = jax.random.split(key, 3)
    node_ids = jax.random.randint(k_ids, (num_nodes,), 0, vocab_size, dtype=jnp.int32)
    edge_index = jax.random.randint(k_edges, (2, num_edges), 0, num_nodes,
                                    dtype=jnp.int32)
    # first 8 nodes -> graph 0, last 8 nodes -> graph 1
    batch = jnp.concatenate([jnp.zeros(8, jnp.int32), jnp.ones(8, jnp.int32)])

    params = init_params(k_params, vocab_size, embed_dim)

    fwd = jax.jit(url_gnn_forward, static_argnames=("num_graphs",))
    out = fwd(node_ids, edge_index, batch, params, num_graphs=num_graphs)
    jax.block_until_ready(out)
    assert out.shape == (num_graphs,)
    assert bool(jnp.all((out >= 0.0) & (out <= 1.0)))
    print("KERNEL_OK")
</pallas_src>

<mosaic_0001>
module attributes {stable_mosaic.version = 11 : i64} {
  func.func private @main(%arg0: i32) attributes {dimension_semantics = [#tpu.dimension_semantics<core_parallel>], iteration_bounds = array<i64: 2>, tpu.core_type = #tpu.core_type<sc_scalar_subcore>, window_params = []} {
    return
  }
}

module attributes {stable_mosaic.version = 11 : i64} {
  func.func private @main(%arg0: i32) attributes {dimension_semantics = [#tpu.dimension_semantics<core_parallel>], iteration_bounds = array<i64: 2>, tpu.core_type = #tpu.core_type<sc_scalar_subcore>, window_params = []} {
    return
  }
}

module attributes {stable_mosaic.version = 11 : i64} {
  func.func @_gcn1_kernel(%arg0: i32, %arg1: i32, %arg2: memref<256x256xi8, #tpu.memory_space<vmem>>, %arg3: memref<256x64xbf16, #tpu.memory_space<vmem>>, %arg4: memref<256x1xf32, #tpu.memory_space<vmem>>, %arg5: memref<64x128xf32, #tpu.memory_space<vmem>>, %arg6: memref<1x128xf32, #tpu.memory_space<vmem>>, %arg7: memref<128x64xf32, #tpu.memory_space<vmem>>, %arg8: memref<256x64xbf16, #tpu.memory_space<vmem>>, %arg9: memref<256x64xf32, #tpu.memory_space<vmem>>) attributes {dimension_semantics = [#tpu.dimension_semantics<parallel>, #tpu.dimension_semantics<arbitrary>], iteration_bounds = array<i64: 1, 1>, scalar_prefetch = 0 : i64, scratch_operands = 1 : i64, tpu.core_type = #tpu.core_type<tc>, window_params = [{transform_indices = @transform_0, window_bounds = array<i64: 256, 256>}, {pipeline_mode = #tpu.pipeline_mode<synchronous>, transform_indices = @transform_1, window_bounds = array<i64: 256, 64>}, {transform_indices = @transform_2, window_bounds = array<i64: 256, 1>}, {pipeline_mode = #tpu.pipeline_mode<synchronous>, transform_indices = @transform_3, window_bounds = array<i64: 64, 128>}, {pipeline_mode = #tpu.pipeline_mode<synchronous>, transform_indices = @transform_4, window_bounds = array<i64: 1, 128>}, {pipeline_mode = #tpu.pipeline_mode<synchronous>, transform_indices = @transform_5, window_bounds = array<i64: 128, 64>}, {transform_indices = @transform_6, window_bounds = array<i64: 256, 64>}]} {
    %c0_i32 = arith.constant 0 : i32
    %0 = arith.cmpi eq, %arg1, %c0_i32 : i32
    %1 = arith.extui %0 : i1 to i32
    %c0_i32_0 = arith.constant 0 : i32
    %2 = arith.cmpi ne, %1, %c0_i32_0 : i32
    scf.if %2 {
      %cst_9 = arith.constant 0.000000e+00 : f32
      %16 = vector.broadcast %cst_9 : f32 to vector<256x64xf32>
      %c0_10 = arith.constant 0 : index
      %c0_11 = arith.constant 0 : index
      %17 = vector.load %arg9[%c0_10, %c0_11] : memref<256x64xf32, #tpu.memory_space<vmem>>, vector<256x64xf32>
      tpu.vector_store %arg9[%c0_10, %c0_11], %16 {strides = array<i32>} : memref<256x64xf32, #tpu.memory_space<vmem>>, vector<256x64xf32>,
    } else {
    }
    %c256_i32 = arith.constant 256 : i32
    %3 = arith.muli %arg1, %c256_i32 : i32
    %4 = tpu.assume_multiple %3, 256 : i32
    %5 = arith.index_cast %4 : i32 to index
    %c0 = arith.constant 0 : index
    %6 = vector.load %arg3[%5, %c0] : memref<256x64xbf16, #tpu.memory_space<vmem>>, vector<256x64xbf16>
    %c0_1 = arith.constant 0 : index
    %c0_2 = arith.constant 0 : index
    %7 = vector.load %arg9[%c0_1, %c0_2] : memref<256x64xf32, #tpu.memory_space<vmem>>, vector<256x64xf32>
    %c0_3 = arith.constant 0 : index
    %c0_4 = arith.constant 0 : index
    %8 = vector.load %arg2[%c0_3, %c0_4] : memref<256x256xi8, #tpu.memory_space<vmem>>, vector<256x256xi8>
    %9 = arith.sitofp %8 : vector<256x256xi8> to vector<256x256xbf16>
    %cst = arith.constant dense<0.000000e+00> : vector<256x64xf32>
    %10 = tpu.matmul %9, %6, %cst {dimension_numbers = #tpu.dot_dimension_numbers<[1], [0], [0], [1], [0, 0, 1, 1], [], []>} : vector<256x256xbf16>, vector<256x64xbf16>, vector<256x64xf32> -> vector<256x64xf32>
    %11 = arith.addf %7, %10 : vector<256x64xf32>
    %c0_5 = arith.constant 0 : index
    %c0_6 = arith.constant 0 : index
    %12 = vector.load %arg9[%c0_5, %c0_6] : memref<256x64xf32, #tpu.memory_space<vmem>>, vector<256x64xf32>
    tpu.vector_store %arg9[%c0_5, %c0_6], %11 {strides = array<i32>} : memref<256x64xf32, #tpu.memory_space<vmem>>, vector<256x64xf32>,
    %c0_i32_7 = arith.constant 0 : i32
    %13 = arith.cmpi eq, %arg1, %c0_i32_7 : i32
    %14 = arith.extui %13 : i1 to i32
    %c0_i32_8 = arith.constant 0 : i32
    %15 = arith.cmpi ne, %14, %c0_i32_8 : i32
    scf.if %15 {
      %c0_9 = arith.constant 0 : index
      %c0_10 = arith.constant 0 : index
      %16 = vector.load %arg9[%c0_9, %c0_10] : memref<256x64xf32, #tpu.memory_space<vmem>>, vector<256x64xf32>
      %c0_11 = arith.constant 0 : index
      %c0_12 = arith.constant 0 : index
      %17 = vector.load %arg4[%c0_11, %c0_12] : memref<256x1xf32, #tpu.memory_space<vmem>>, vector<256x1xf32>
      %18 = vector.broadcast %17 : vector<256x1xf32> to vector<256x64xf32>
      %19 = arith.mulf %16, %18 : vector<256x64xf32>
      %c0_13 = arith.constant 0 : index
      %c0_14 = arith.constant 0 : index
      %20 = vector.load %arg5[%c0_13, %c0_14] : memref<64x128xf32, #tpu.memory_space<vmem>>, vector<64x128xf32>
      %cst_15 = arith.constant dense<0.000000e+00> : vector<256x128xf32>
      %21 = tpu.matmul %19, %20, %cst_15 {dimension_numbers = #tpu.dot_dimension_numbers<[1], [0], [0], [1], [0, 0, 1, 1], [], []>} : vector<256x64xf32>, vector<64x128xf32>, vector<256x128xf32> -> vector<256x128xf32>
      %c0_16 = arith.constant 0 : index
      %c0_17 = arith.constant 0 : index
      %22 = vector.load %arg6[%c0_16, %c0_17] : memref<1x128xf32, #tpu.memory_space<vmem>>, vector<1x128xf32>
      %23 = vector.broadcast %22 : vector<1x128xf32> to vector<256x128xf32>
      %24 = arith.addf %21, %23 : vector<256x128xf32>
      %cst_18 = arith.constant 0.000000e+00 : f32
      %25 = vector.broadcast %cst_18 : f32 to vector<256x128xf32>
      %26 = arith.maximumf %24, %25 : vector<256x128xf32>
      %c0_19 = arith.constant 0 : index
      %c0_20 = arith.constant 0 : index
      %27 = vector.load %arg7[%c0_19, %c0_20] : memref<128x64xf32, #tpu.memory_space<vmem>>, vector<128x64xf32>
      %cst_21 = arith.constant dense<0.000000e+00> : vector<256x64xf32>
      %28 = tpu.matmul %26, %27, %cst_21 {dimension_numbers = #tpu.dot_dimension_numbers<[1], [0], [0], [1], [0, 0, 1, 1], [], []>} : vector<256x128xf32>, vector<128x64xf32>, vector<256x64xf32> -> vector<256x64xf32>
      %c0_22 = arith.constant 0 : index
      %c0_23 = arith.constant 0 : index
      %29 = vector.load %arg4[%c0_22, %c0_23] : memref<256x1xf32, #tpu.memory_space<vmem>>, vector<256x1xf32>
      %30 = vector.broadcast %29 : vector<256x1xf32> to vector<256x64xf32>
      %31 = arith.mulf %28, %30 : vector<256x64xf32>
      %32 = arith.truncf %31 : vector<256x64xf32> to vector<256x64xbf16>
      %c0_24 = arith.constant 0 : index
      %c0_25 = arith.constant 0 : index
      %33 = vector.load %arg8[%c0_24, %c0_25] : memref<256x64xbf16, #tpu.memory_space<vmem>>, vector<256x64xbf16>
      tpu.vector_store %arg8[%c0_24, %c0_25], %32 {strides = array<i32>} : memref<256x64xbf16, #tpu.memory_space<vmem>>, vector<256x64xbf16>,
    } else {
    }
    return
  }
  func.func @transform_0(%arg0: i32, %arg1: i32) -> (i32, i32) {
    %c0_i32 = arith.constant 0 : i32
    return %arg0, %arg1 : i32, i32
  }
  func.func @transform_1(%arg0: i32, %arg1: i32) -> (i32, i32) {
    %c0_i32 = arith.constant 0 : i32
    %c0_i32_0 = arith.constant 0 : i32
    %c0_i32_1 = arith.constant 0 : i32
    return %c0_i32, %c0_i32_0 : i32, i32
  }
  func.func @transform_2(%arg0: i32, %arg1: i32) -> (i32, i32) {
    %c0_i32 = arith.constant 0 : i32
    %c0_i32_0 = arith.constant 0 : i32
    return %arg0, %c0_i32 : i32, i32
  }
  func.func @transform_3(%arg0: i32, %arg1: i32) -> (i32, i32) {
    %c0_i32 = arith.constant 0 : i32
    %c0_i32_0 = arith.constant 0 : i32
    %c0_i32_1 = arith.constant 0 : i32
    return %c0_i32, %c0_i32_0 : i32, i32
  }
  func.func @transform_4(%arg0: i32, %arg1: i32) -> (i32, i32) {
    %c0_i32 = arith.constant 0 : i32
    %c0_i32_0 = arith.constant 0 : i32
    %c0_i32_1 = arith.constant 0 : i32
    return %c0_i32, %c0_i32_0 : i32, i32
  }
  func.func @transform_5(%arg0: i32, %arg1: i32) -> (i32, i32) {
    %c0_i32 = arith.constant 0 : i32
    %c0_i32_0 = arith.constant 0 : i32
    %c0_i32_1 = arith.constant 0 : i32
    return %c0_i32, %c0_i32_0 : i32, i32
  }
  func.func @transform_6(%arg0: i32, %arg1: i32) -> (i32, i32) {
    %c0_i32 = arith.constant 0 : i32
    %c0_i32_0 = arith.constant 0 : i32
    return %arg0, %c0_i32 : i32, i32
  }
}

module attributes {stable_mosaic.version = 11 : i64} {
  func.func @_gcn2_kernel(%arg0: i32, %arg1: i32, %arg2: memref<256x256xi8, #tpu.memory_space<vmem>>, %arg3: memref<256x64xbf16, #tpu.memory_space<vmem>>, %arg4: memref<256x1xf32, #tpu.memory_space<vmem>>, %arg5: memref<1x64xf32, #tpu.memory_space<vmem>>, %arg6: memref<256x64xbf16, #tpu.memory_space<vmem>>, %arg7: memref<256x64xf32, #tpu.memory_space<vmem>>) attributes {dimension_semantics = [#tpu.dimension_semantics<parallel>, #tpu.dimension_semantics<arbitrary>], iteration_bounds = array<i64: 1, 1>, scalar_prefetch = 0 : i64, scratch_operands = 1 : i64, tpu.core_type = #tpu.core_type<tc>, window_params = [{transform_indices = @transform_0, window_bounds = array<i64: 256, 256>}, {pipeline_mode = #tpu.pipeline_mode<synchronous>, transform_indices = @transform_1, window_bounds = array<i64: 256, 64>}, {transform_indices = @transform_2, window_bounds = array<i64: 256, 1>}, {pipeline_mode = #tpu.pipeline_mode<synchronous>, transform_indices = @transform_3, window_bounds = array<i64: 1, 64>}, {transform_indices = @transform_4, window_bounds = array<i64: 256, 64>}]} {
    %c0_i32 = arith.constant 0 : i32
    %0 = arith.cmpi eq, %arg1, %c0_i32 : i32
    %1 = arith.extui %0 : i1 to i32
    %c0_i32_0 = arith.constant 0 : i32
    %2 = arith.cmpi ne, %1, %c0_i32_0 : i32
    scf.if %2 {
      %cst_9 = arith.constant 0.000000e+00 : f32
      %16 = vector.broadcast %cst_9 : f32 to vector<256x64xf32>
      %c0_10 = arith.constant 0 : index
      %c0_11 = arith.constant 0 : index
      %17 = vector.load %arg7[%c0_10, %c0_11] : memref<256x64xf32, #tpu.memory_space<vmem>>, vector<256x64xf32>
      tpu.vector_store %arg7[%c0_10, %c0_11], %16 {strides = array<i32>} : memref<256x64xf32, #tpu.memory_space<vmem>>, vector<256x64xf32>,
    } else {
    }
    %c256_i32 = arith.constant 256 : i32
    %3 = arith.muli %arg1, %c256_i32 : i32
    %4 = tpu.assume_multiple %3, 256 : i32
    %5 = arith.index_cast %4 : i32 to index
    %c0 = arith.constant 0 : index
    %6 = vector.load %arg3[%5, %c0] : memref<256x64xbf16, #tpu.memory_space<vmem>>, vector<256x64xbf16>
    %c0_1 = arith.constant 0 : index
    %c0_2 = arith.constant 0 : index
    %7 = vector.load %arg7[%c0_1, %c0_2] : memref<256x64xf32, #tpu.memory_space<vmem>>, vector<256x64xf32>
    %c0_3 = arith.constant 0 : index
    %c0_4 = arith.constant 0 : index
    %8 = vector.load %arg2[%c0_3, %c0_4] : memref<256x256xi8, #tpu.memory_space<vmem>>, vector<256x256xi8>
    %9 = arith.sitofp %8 : vector<256x256xi8> to vector<256x256xbf16>
    %cst = arith.constant dense<0.000000e+00> : vector<256x64xf32>
    %10 = tpu.matmul %9, %6, %cst {dimension_numbers = #tpu.dot_dimension_numbers<[1], [0], [0], [1], [0, 0, 1, 1], [], []>} : vector<256x256xbf16>, vector<256x64xbf16>, vector<256x64xf32> -> vector<256x64xf32>
    %11 = arith.addf %7, %10 : vector<256x64xf32>
    %c0_5 = arith.constant 0 : index
    %c0_6 = arith.constant 0 : index
    %12 = vector.load %arg7[%c0_5, %c0_6] : memref<256x64xf32, #tpu.memory_space<vmem>>, vector<256x64xf32>
    tpu.vector_store %arg7[%c0_5, %c0_6], %11 {strides = array<i32>} : memref<256x64xf32, #tpu.memory_space<vmem>>, vector<256x64xf32>,
    %c0_i32_7 = arith.constant 0 : i32
    %13 = arith.cmpi eq, %arg1, %c0_i32_7 : i32
    %14 = arith.extui %13 : i1 to i32
    %c0_i32_8 = arith.constant 0 : i32
    %15 = arith.cmpi ne, %14, %c0_i32_8 : i32
    scf.if %15 {
      %c0_9 = arith.constant 0 : index
      %c0_10 = arith.constant 0 : index
      %16 = vector.load %arg7[%c0_9, %c0_10] : memref<256x64xf32, #tpu.memory_space<vmem>>, vector<256x64xf32>
      %c0_11 = arith.constant 0 : index
      %c0_12 = arith.constant 0 : index
      %17 = vector.load %arg4[%c0_11, %c0_12] : memref<256x1xf32, #tpu.memory_space<vmem>>, vector<256x1xf32>
      %18 = vector.broadcast %17 : vector<256x1xf32> to vector<256x64xf32>
      %19 = arith.mulf %16, %18 : vector<256x64xf32>
      %c0_13 = arith.constant 0 : index
      %c0_14 = arith.constant 0 : index
      %20 = vector.load %arg5[%c0_13, %c0_14] : memref<1x64xf32, #tpu.memory_space<vmem>>, vector<1x64xf32>
      %21 = vector.broadcast %20 : vector<1x64xf32> to vector<256x64xf32>
      %22 = arith.addf %19, %21 : vector<256x64xf32>
      %cst_15 = arith.constant 0.000000e+00 : f32
      %23 = vector.broadcast %cst_15 : f32 to vector<256x64xf32>
      %24 = arith.maximumf %22, %23 : vector<256x64xf32>
      %25 = arith.truncf %24 : vector<256x64xf32> to vector<256x64xbf16>
      %c0_16 = arith.constant 0 : index
      %c0_17 = arith.constant 0 : index
      %26 = vector.load %arg6[%c0_16, %c0_17] : memref<256x64xbf16, #tpu.memory_space<vmem>>, vector<256x64xbf16>
      tpu.vector_store %arg6[%c0_16, %c0_17], %25 {strides = array<i32>} : memref<256x64xbf16, #tpu.memory_space<vmem>>, vector<256x64xbf16>,
    } else {
    }
    return
  }
  func.func @transform_0(%arg0: i32, %arg1: i32) -> (i32, i32) {
    %c0_i32 = arith.constant 0 : i32
    return %arg0, %arg1 : i32, i32
  }
  func.func @transform_1(%arg0: i32, %arg1: i32) -> (i32, i32) {
    %c0_i32 = arith.constant 0 : i32
    %c0_i32_0 = arith.constant 0 : i32
    %c0_i32_1 = arith.constant 0 : i32
    return %c0_i32, %c0_i32_0 : i32, i32
  }
  func.func @transform_2(%arg0: i32, %arg1: i32) -> (i32, i32) {
    %c0_i32 = arith.constant 0 : i32
    %c0_i32_0 = arith.constant 0 : i32
    return %arg0, %c0_i32 : i32, i32
  }
  func.func @transform_3(%arg0: i32, %arg1: i32) -> (i32, i32) {
    %c0_i32 = arith.constant 0 : i32
    %c0_i32_0 = arith.constant 0 : i32
    %c0_i32_1 = arith.constant 0 : i32
    return %c0_i32, %c0_i32_0 : i32, i32
  }
  func.func @transform_4(%arg0: i32, %arg1: i32) -> (i32, i32) {
    %c0_i32 = arith.constant 0 : i32
    %c0_i32_0 = arith.constant 0 : i32
    return %arg0, %c0_i32 : i32, i32
  }
}

module attributes {stable_mosaic.version = 11 : i64} {
  func.func @_pool_kernel(%arg0: i32, %arg1: memref<16x256xbf16, #tpu.memory_space<vmem>>, %arg2: memref<256x64xbf16, #tpu.memory_space<vmem>>, %arg3: memref<16x64xf32, #tpu.memory_space<vmem>>, %arg4: memref<16x64xf32, #tpu.memory_space<vmem>>) attributes {dimension_semantics = [#tpu.dimension_semantics<arbitrary>], iteration_bounds = array<i64: 1>, scalar_prefetch = 0 : i64, scratch_operands = 1 : i64, tpu.core_type = #tpu.core_type<tc>, window_params = [{transform_indices = @transform_0, window_bounds = array<i64: 16, 256>}, {transform_indices = @transform_1, window_bounds = array<i64: 256, 64>}, {pipeline_mode = #tpu.pipeline_mode<synchronous>, transform_indices = @transform_2, window_bounds = array<i64: 16, 64>}]} {
    %c0_i32 = arith.constant 0 : i32
    %0 = arith.cmpi eq, %arg0, %c0_i32 : i32
    %1 = arith.extui %0 : i1 to i32
    %c0_i32_0 = arith.constant 0 : i32
    %2 = arith.cmpi ne, %1, %c0_i32_0 : i32
    scf.if %2 {
      %cst_10 = arith.constant 0.000000e+00 : f32
      %12 = vector.broadcast %cst_10 : f32 to vector<16x64xf32>
      %c0_11 = arith.constant 0 : index
      %c0_12 = arith.constant 0 : index
      %13 = vector.load %arg4[%c0_11, %c0_12] : memref<16x64xf32, #tpu.memory_space<vmem>>, vector<16x64xf32>
      tpu.vector_store %arg4[%c0_11, %c0_12], %12 {strides = array<i32>} : memref<16x64xf32, #tpu.memory_space<vmem>>, vector<16x64xf32>,
    } else {
    }
    %c0 = arith.constant 0 : index
    %c0_1 = arith.constant 0 : index
    %3 = vector.load %arg4[%c0, %c0_1] : memref<16x64xf32, #tpu.memory_space<vmem>>, vector<16x64xf32>
    %c0_2 = arith.constant 0 : index
    %c0_3 = arith.constant 0 : index
    %4 = vector.load %arg1[%c0_2, %c0_3] : memref<16x256xbf16, #tpu.memory_space<vmem>>, vector<16x256xbf16>
    %c0_4 = arith.constant 0 : index
    %c0_5 = arith.constant 0 : index
    %5 = vector.load %arg2[%c0_4, %c0_5] : memref<256x64xbf16, #tpu.memory_space<vmem>>, vector<256x64xbf16>
    %cst = arith.constant dense<0.000000e+00> : vector<16x64xf32>
    %6 = tpu.matmul %4, %5, %cst {dimension_numbers = #tpu.dot_dimension_numbers<[1], [0], [0], [1], [0, 0, 1, 1], [], []>} : vector<16x256xbf16>, vector<256x64xbf16>, vector<16x64xf32> -> vector<16x64xf32>
    %7 = arith.addf %3, %6 : vector<16x64xf32>
    %c0_6 = arith.constant 0 : index
    %c0_7 = arith.constant 0 : index
    %8 = vector.load %arg4[%c0_6, %c0_7] : memref<16x64xf32, #tpu.memory_space<vmem>>, vector<16x64xf32>
    tpu.vector_store %arg4[%c0_6, %c0_7], %7 {strides = array<i32>} : memref<16x64xf32, #tpu.memory_space<vmem>>, vector<16x64xf32>,
    %c0_i32_8 = arith.constant 0 : i32
    %9 = arith.cmpi eq, %arg0, %c0_i32_8 : i32
    %10 = arith.extui %9 : i1 to i32
    %c0_i32_9 = arith.constant 0 : i32
    %11 = arith.cmpi ne, %10, %c0_i32_9 : i32
    scf.if %11 {
      %c0_10 = arith.constant 0 : index
      %c0_11 = arith.constant 0 : index
      %12 = vector.load %arg4[%c0_10, %c0_11] : memref<16x64xf32, #tpu.memory_space<vmem>>, vector<16x64xf32>
      %c0_12 = arith.constant 0 : index
      %c0_13 = arith.constant 0 : index
      %13 = vector.load %arg3[%c0_12, %c0_13] : memref<16x64xf32, #tpu.memory_space<vmem>>, vector<16x64xf32>
      tpu.vector_store %arg3[%c0_12, %c0_13], %12 {strides = array<i32>} : memref<16x64xf32, #tpu.memory_space<vmem>>, vector<16x64xf32>,
    } else {
    }
    return
  }
  func.func @transform_0(%arg0: i32) -> (i32, i32) {
    %c0_i32 = arith.constant 0 : i32
    %c0_i32_0 = arith.constant 0 : i32
    return %c0_i32, %arg0 : i32, i32
  }
  func.func @transform_1(%arg0: i32) -> (i32, i32) {
    %c0_i32 = arith.constant 0 : i32
    %c0_i32_0 = arith.constant 0 : i32
    return %arg0, %c0_i32 : i32, i32
  }
  func.func @transform_2(%arg0: i32) -> (i32, i32) {
    %c0_i32 = arith.constant 0 : i32
    %c0_i32_0 = arith.constant 0 : i32
    %c0_i32_1 = arith.constant 0 : i32
    return %c0_i32, %c0_i32_0 : i32, i32
  }
}

</mosaic_0001>

<bundles_post_ra>
// kernel: url_gnn_forward.5
= control target key start
LH: loop header
LB: loop body
LE: loop exit
PB: predicated region body
PF: predicated region fallthrough
CT: control target
= control target key end

     0   :  { %vm16_vm0 = vcmask 523264   ;;  %v278_v18 = vmov 0.0   ;;  %s360_s1 = inlined_call_operand.vmem [shape: bf16[256,64], index: 1, kind: input, shape index: {}]   ;;  %s361_s0 = inlined_call_operand.vmem [shape: bf16[16,256], index: 0, kind: input, shape index: {}]   ;;  %s362_s2 = inlined_call_operand.vmem [shape: f32[16,64], index: 2, kind: output, shape index: {}]  }
   0x1   :  { %v259_v0 = vld [vmem:[%s360_s1 + $0x78] sm:$0xff]   ;;  %v261_v2 = vld [vmem:[%s360_s1 + $0x70] sm:$0xff]   ;;  %v263_v4 = vld [vmem:[%s360_s1 + $0x68] sm:$0xff]   ;;  %17 = vst.msk [vmem:[#allocation2] sm:$0xff] %vm16_vm0, %v278_v18 }
   0x2   :  { %v260_v1 = vld [vmem:[%s360_s1 + $0x38] sm:$0xff]   ;;  %236 = vmatprep.subr.bf16.mxu0 %v259_v0  ;;  %v262_v3 = vld [vmem:[%s360_s1 + $0x30] sm:$0xff]   ;;  %v264_v5 = vld [vmem:[%s360_s1 + $0x28] sm:$0xff]   ;;  %18 = vst.msk [vmem:[#allocation2 + $0x8] sm:$0xff] %vm16_vm0, %v278_v18 }
   0x3   :  { %237 = vmatpush3.bf16.msra.mxu0 %v260_v1  ;;  %v265_v6 = vld [vmem:[%s360_s1 + $0x60] sm:$0xff]   ;;  %v267_v8 = vld [vmem:[%s360_s1 + $0x58] sm:$0xff]   ;;  %v269_v10 = vld [vmem:[%s360_s1 + $0x50] sm:$0xff]  }
   0x4   :  { %238 = vmatprep.subr.bf16.mxu0 %v261_v2  ;;  %v266_v7 = vld [vmem:[%s360_s1 + $0x20] sm:$0xff]   ;;  %v268_v9 = vld [vmem:[%s360_s1 + $0x18] sm:$0xff]   ;;  %v270_v12 = vld [vmem:[%s360_s1 + $0x10] sm:$0xff]  }
   0x5   :  { %v277_v11 = vld [vmem:[%s361_s0 + $0x4] ss:$8 sps:$4 sm:$0xff]   ;;  %v275_v17 = vld [vmem:[%s361_s0] ss:$8 sps:$4 sm:$0xff]  }
   0x6   :  { %193 = vmatprep.mubr.bf16.mxu0 %v277_v11  ;;  %v271_v13 = vld [vmem:[%s360_s1 + $0x48] sm:$0xff]   ;;  %v273_v15 = vld [vmem:[%s360_s1 + $0x40] sm:$0xff]  }
   0x7   :  { %239 = vmatpush3.bf16.msra.mxu0 %v262_v3  ;;  %v272_v14 = vld [vmem:[%s360_s1 + $0x8] sm:$0xff]   ;;  %v274_v16 = vld [vmem:[%s360_s1] sm:$0xff]  }
   0x8   :  { %240 = vmatprep.subr.bf16.mxu0 %v263_v4  ;;  %v19_v20 = vld [vmem:[#allocation2] sm:$0xff] }
   0x9   :  { %v20_v25 = vld [vmem:[#allocation2 + $0x8] sm:$0xff] }
   0xb   :  { %241 = vmatpush3.bf16.msra.mxu0 %v264_v5 }
   0xc   :  { %242 = vmatprep.subr.bf16.mxu0 %v265_v6 }
   0xf   :  { %243 = vmatpush3.bf16.msra.mxu0 %v266_v7 }
  0x10   :  { %244 = vmatprep.subr.bf16.mxu0 %v267_v8 }
  0x13   :  { %245 = vmatpush3.bf16.msra.mxu0 %v268_v9 }
  0x14   :  { %246 = vmatprep.subr.bf16.mxu0 %v269_v10 }
  0x17   :  { %247 = vmatpush3.bf16.msra.mxu0 %v270_v12 }
  0x18   :  { %248 = vmatprep.subr.bf16.mxu0 %v271_v13 }
  0x1b   :  { %249 = vmatpush3.bf16.msra.mxu0 %v272_v14 }
  0x1c   :  { %250 = vmatprep.subr.bf16.mxu0 %v273_v15 }
  0x1f   :  { %251 = vmatpush3.bf16.msra.mxu0 %v274_v16 }
  0x22   :  { %194 = vmatmul.mubr.bf16.vlgmr.msra.gmra.mxu0 %v275_v17 }
  0xe2   :  { %v252_v19 = vpop.f32.mrf.mxu0 }
  0xe4   :  { %v253_v21 = vpop.f32.mrf.mxu0 }
  0xe5   :  { %v254_v22 = vadd.f32 %v253_v21, %v252_v19 }
  0xe6   :  { %v255_v23 = vpop.f32.mrf.mxu0 }
  0xe7   :  { %v202_v24 = vadd.f32 %v254_v22, %v19_v20 }
  0xe8   :  { %v256_v26 = vpop.f32.mrf.mxu0 }
  0xe9   :  { %205 = vst.msk [vmem:[#allocation2] sm:$0xff] %vm16_vm0, %v202_v24  ;;  %v257_v27 = vadd.f32 %v256_v26, %v255_v23 }
  0xeb   :  { %v203_v28 = vadd.f32 %v257_v27, %v20_v25 }
  0xed   :  { %206 = vst.msk [vmem:[#allocation2 + $0x8] sm:$0xff] %vm16_vm0, %v203_v28 }
  0xf0   :  { %v210_v29 = vld [vmem:[#allocation2] sm:$0xff] }
  0xf1   :  { %212 = vst.msk [vmem:[%s362_s2] sm:$0xff] %vm16_vm0, %v210_v29 }
  0xf4   :  { %v211_v30 = vld [vmem:[#allocation2 + $0x8] sm:$0xff] }
  0xf5   :  { %213 = vst.msk [vmem:[%s362_s2 + $0x8] sm:$0xff] %vm16_vm0, %v211_v30 }

// kernel: url_gnn_forward.4
= control target key start
LH: loop header
LB: loop body
LE: loop exit
PB: predicated region body
PF: predicated region fallthrough
CT: control target
= control target key end

     0   :  { %v1220_v1 = vmov 0   ;;  %vm22_vm0 = vcmask 523264   ;;  %vm952_vm1 = vcmask 519168   ;;  %s1713_s1 = inlined_call_operand.vmem [shape: bf16[256,64], index: 1, kind: input, shape index: {}]   ;;  %s1714_s0 = inlined_call_operand.vmem [shape: s8[256,256], index: 0, kind: input, shape index: {}]   ;;  %s1715_s2 = inlined_call_operand.vmem [shape: f32[256,1], index: 2, kind: input, shape index: {}]   ;;  %s1716_s3 = inlined_call_operand.vmem [shape: f32[1,64], index: 3, kind: input, shape index: {}]   ;;  %s1717_s4 = inlined_call_operand.vmem [shape: bf16[256,64], index: 4, kind: output, shape index: {}]  }
   0x1   :  { %v1204_v0 = vld [vmem:[%s1713_s1 + $0x78] sm:$0xff]   ;;  %1203 = vset.pattern.permute.xlu1 %v1220_v1  ;;  %1202 = vset.pattern.permute.xlu0 %v1220_v1  ;;  %v1206_v3 = vld [vmem:[%s1713_s1 + $0x70] sm:$0xff]   ;;  %v1208_v5 = vld [vmem:[%s1713_s1 + $0x68] sm:$0xff]  }
   0x2   :  { %v1205_v2 = vld [vmem:[%s1713_s1 + $0x38] sm:$0xff]   ;;  %1072 = vmatprep.subr.bf16.mxu0 %v1204_v0  ;;  %1184 = vmatprep.subr.bf16.mxu1 %v1204_v0  ;;  %v1207_v4 = vld [vmem:[%s1713_s1 + $0x30] sm:$0xff]   ;;  %v1209_v6 = vld [vmem:[%s1713_s1 + $0x28] sm:$0xff]  }
   0x3   :  { %1073 = vmatpush3.bf16.msra.mxu0 %v1205_v2  ;;  %1192 = vmatpush3.bf16.msra.mxu1 %v1205_v2  ;;  %v1210_v7 = vld [vmem:[%s1713_s1 + $0x60] sm:$0xff]   ;;  %v1212_v9 = vld [vmem:[%s1713_s1 + $0x58] sm:$0xff]   ;;  %v1214_v11 = vld [vmem:[%s1713_s1 + $0x50] sm:$0xff]  }
   0x4   :  { %1074 = vmatprep.subr.bf16.mxu0 %v1206_v3  ;;  %1185 = vmatprep.subr.bf16.mxu1 %v1206_v3  ;;  %v1211_v8 = vld [vmem:[%s1713_s1 + $0x20] sm:$0xff]   ;;  %v1213_v10 = vld [vmem:[%s1713_s1 + $0x18] sm:$0xff]   ;;  %v125_v12 = vld [vmem:[%s1714_s0 + $0x8] sm:$0xff] }
   0x5   :  { %v133_v13 = vld [vmem:[%s1714_s0 + $0x48] sm:$0xff]  ;;  %v141_v14 = vunpack.c.l.s8.bf16 %v125_v12  ;;  %v1215_v16 = vld [vmem:[%s1713_s1 + $0x10] sm:$0xff]   ;;  %v529_v18 = vld [vmem:[%s1715_s2] sm:$0xff]  ;;  %v143_v31 = vunpack.c.h.s8.bf16 %v125_v12 }
   0x6   :  { %v157_v15 = vunpack.c.l.s8.bf16 %v133_v13  ;;  %v531_v17 = vld [vmem:[%s1715_s2 + $0x10] sm:$0xff]  ;;  %v1216_v19 = vld [vmem:[%s1713_s1 + $0x48] sm:$0xff]   ;;  %563 = vperm.xlu0 %1202, %v529_v18   ;;  %v532_v21 = vld [vmem:[%s1715_s2 + $0x18] sm:$0xff]  ;;  %v159_v32 = vunpack.c.h.s8.bf16 %v133_v13 }
   0x7   :  { %1075 = vmatpush3.bf16.msra.mxu0 %v1207_v4  ;;  %1193 = vmatpush3.bf16.msra.mxu1 %v1207_v4  ;;  %v1217_v20 = vld [vmem:[%s1713_s1 + $0x8] sm:$0xff]   ;;  %v1218_v23 = vld [vmem:[%s1713_s1 + $0x40] sm:$0xff]   ;;  %v536_v33 = vld [vmem:[%s1715_s2 + $0x38] sm:$0xff] }
   0x8   :  { %1076 = vmatprep.subr.bf16.mxu0 %v1208_v5  ;;  %1186 = vmatprep.subr.bf16.mxu1 %v1208_v5  ;;  %v530_v22 = vld [vmem:[%s1715_s2 + $0x8] sm:$0xff]  ;;  %v1219_v24 = vld [vmem:[%s1713_s1] sm:$0xff]   ;;  %v535_v34 = vld [vmem:[%s1715_s2 + $0x30] sm:$0xff] }
   0x9   :  { %300 = vmatprep.mubr.bf16.mxu0 %v141_v14  ;;  %364 = vmatprep.mubr.bf16.mxu1 %v157_v15  ;;  %v124_v25 = vld [vmem:[%s1714_s0] sm:$0xff]  ;;  %v534_v27 = vld [vmem:[%s1715_s2 + $0x28] sm:$0xff]  ;;  %v127_v35 = vld [vmem:[%s1714_s0 + $0x18] sm:$0xff] }
   0xa   :  { %573 = vperm.xlu1 %1203, %v531_v17   ;;  %568 = vperm.xlu0 %1202, %v530_v22   ;;  %v132_v26 = vld [vmem:[%s1714_s0 + $0x40] sm:$0xff]  ;;  %v140_v29 = vunpack.c.l.s8.bf16 %v124_v25  ;;  %v135_v36 = vld [vmem:[%s1714_s0 + $0x58] sm:$0xff]  ;;  %v538_v37 = vld [vmem:[%s1715_s2 + $0x48] sm:$0xff]  ;;  %v142_v39 = vunpack.c.h.s8.bf16 %v124_v25  ;;  %v145_v41 = vunpack.c.l.s8.bf16 %v127_v35  ;;  %v147_v51 = vunpack.c.h.s8.bf16 %v127_v35 }
   0xb   :  { %1077 = vmatpush3.bf16.msra.mxu0 %v1209_v6  ;;  %1194 = vmatpush3.bf16.msra.mxu1 %v1209_v6  ;;  %v533_v28 = vld [vmem:[%s1715_s2 + $0x20] sm:$0xff]  ;;  %v156_v30 = vunpack.c.l.s8.bf16 %v132_v26  ;;  %v158_v40 = vunpack.c.h.s8.bf16 %v132_v26  ;;  %v161_v42 = vunpack.c.l.s8.bf16 %v135_v36  ;;  %v540_v43 = vld [vmem:[%s1715_s2 + $0x58] sm:$0xff]  ;;  %v539_v44 = vld [vmem:[%s1715_s2 + $0x50] sm:$0xff]  ;;  %v163_v52 = vunpack.c.h.s8.bf16 %v135_v36 }
   0xc   :  { %1078 = vmatprep.subr.bf16.mxu0 %v1210_v7  ;;  %1187 = vmatprep.subr.bf16.mxu1 %v1210_v7  ;;  %v537_v38 = vld [vmem:[%s1715_s2 + $0x40] sm:$0xff]  ;;  %v126_v45 = vld [vmem:[%s1714_s0 + $0x10] sm:$0xff]  ;;  %v542_v47 = vld [vmem:[%s1715_s2 + $0x68] sm:$0xff] }
   0xd   :  { %v134_v46 = vld [vmem:[%s1714_s0 + $0x50] sm:$0xff]  ;;  %v541_v48 = vld [vmem:[%s1715_s2 + $0x60] sm:$0xff]  ;;  %v144_v49 = vunpack.c.l.s8.bf16 %v126_v45  ;;  %v544_v53 = vld [vmem:[%s1715_s2 + $0x78] sm:$0xff]  ;;  %v146_v59 = vunpack.c.h.s8.bf16 %v126_v45 }
   0xe   :  { %578 = vperm.xlu1 %1203, %v532_v21   ;;  %583 = vperm.xlu0 %1202, %v533_v28   ;;  %v160_v50 = vunpack.c.l.s8.bf16 %v134_v46  ;;  %v543_v54 = vld [vmem:[%s1715_s2 + $0x70] sm:$0xff]  ;;  %v129_v55 = vld [vmem:[%s1714_s0 + $0x28] sm:$0xff]  ;;  %v545_v58 = vld [vmem:[%s1715_s2 + $0x80] sm:$0xff]  ;;  %v162_v60 = vunpack.c.h.s8.bf16 %v134_v46 }
   0xf   :  { %1079 = vmatpush3.bf16.msra.mxu0 %v1211_v8  ;;  %1195 = vmatpush3.bf16.msra.mxu1 %v1211_v8  ;;  %v137_v56 = vld [vmem:[%s1714_s0 + $0x68] sm:$0xff]  ;;  %v149_v61 = vunpack.c.l.s8.bf16 %v129_v55  ;;  %v548_v63 = vld [vmem:[%s1715_s2 + $0x98] sm:$0xff]  ;;  %v547_v0 = vld [vmem:[%s1715_s2 + $0x90] sm:$0xff]  ;;  %v151_v7 = vunpack.c.h.s8.bf16 %v129_v55 }
  0x10   :  { %1080 = vmatprep.subr.bf16.mxu0 %v1212_v9  ;;  %1188 = vmatprep.subr.bf16.mxu1 %v1212_v9  ;;  %v546_v57 = vld [vmem:[%s1715_s2 + $0x88] sm:$0xff]  ;;  %v165_v62 = vunpack.c.l.s8.bf16 %v137_v56  ;;  %v128_v1 = vld [vmem:[%s1714_s0 + $0x20] sm:$0xff]  ;;  %v167_v8 = vunpack.c.h.s8.bf16 %v137_v56  ;;  %v552_v9 = vld [vmem:[%s1715_s2 + $0xb8] sm:$0xff] }
  0x11   :  { %v136_v2 = vld [vmem:[%s1714_s0 + $0x60] sm:$0xff]  ;;  %v550_v3 = vld [vmem:[%s1715_s2 + $0xa8] sm:$0xff]  ;;  %v148_v5 = vunpack.c.l.s8.bf16 %v128_v1  ;;  %v139_v12 = vld [vmem:[%s1714_s0 + $0x78] sm:$0xff]  ;;  %v150_v15 = vunpack.c.h.s8.bf16 %v128_v1 }
  0x12   :  { %588 = vperm.xlu1 %1203, %v534_v27   ;;  %593 = vperm.xlu0 %1202, %v535_v34   ;;  %v549_v4 = vld [vmem:[%s1715_s2 + $0xa0] sm:$0xff]  ;;  %v164_v6 = vunpack.c.l.s8.bf16 %v136_v2  ;;  %v554_v13 = vld [vmem:[%s1715_s2 + $0xc8] sm:$0xff]  ;;  %v169_v18 = vunpack.c.l.s8.bf16 %v139_v12  ;;  %v130_v21 = vld [vmem:[%s1714_s0 + $0x30] sm:$0xff]  ;;  %v171_v28 = vunpack.c.h.s8.bf16 %v139_v12 }
  0x13   :  { %1081 = vmatpush3.bf16.msra.mxu0 %v1213_v10  ;;  %1196 = vmatpush3.bf16.msra.mxu1 %v1213_v10  ;;  %v551_v10 = vld [vmem:[%s1715_s2 + $0xb0] sm:$0xff]  ;;  %v553_v14 = vld [vmem:[%s1715_s2 + $0xc0] sm:$0xff]  ;;  %v152_v25 = vunpack.c.l.s8.bf16 %v130_v21 }
  0x14   :  { %1082 = vmatprep.subr.bf16.mxu0 %v1214_v11  ;;  %1189 = vmatprep.subr.bf16.mxu1 %v1214_v11  ;;  %v131_v11 = vld [vmem:[%s1714_s0 + $0x38] sm:$0xff]  ;;  %v138_v22 = vld [vmem:[%s1714_s0 + $0x70] sm:$0xff] }
  0x15   :  { %v153_v17 = vunpack.c.l.s8.bf16 %v131_v11  ;;  %v168_v26 = vunpack.c.l.s8.bf16 %v138_v22  ;;  %v155_v27 = vunpack.c.h.s8.bf16 %v131_v11 }
  0x16   :  { %598 = vperm.xlu1 %1203, %v536_v33   ;;  %603 = vperm.xlu0 %1202, %v537_v38   ;;  %v1221_v33 = vmov 0.0  }
  0x17   :  { %1083 = vmatpush3.bf16.msra.mxu0 %v1215_v16  ;;  %1197 = vmatpush3.bf16.msra.mxu1 %v1215_v16  ;;  %v166_v16 = vunpack.c.h.s8.bf16 %v136_v2  ;;  %23 = vst.msk [vmem:[#allocation2] sm:$0xff] %vm22_vm0, %v1221_v33  ;;  %24 = vst.msk [vmem:[#allocation2 + $0x8] sm:$0xff] %vm22_vm0, %v1221_v33 }
  0x18   :  { %1084 = vmatprep.subr.bf16.mxu0 %v1216_v19  ;;  %1190 = vmatprep.subr.bf16.mxu1 %v1216_v19  ;;  %v556_v19 = vld [vmem:[%s1715_s2 + $0xd8] sm:$0xff]  ;;  %25 = vst.msk [vmem:[#allocation2 + $0x10] sm:$0xff] %vm22_vm0, %v1221_v33  ;;  %26 = vst.msk [vmem:[#allocation2 + $0x18] sm:$0xff] %vm22_vm0, %v1221_v33 }
  0x19   :  { %27 = vst.msk [vmem:[#allocation2 + $0x20] sm:$0xff] %vm22_vm0, %v1221_v33  ;;  %28 = vst.msk [vmem:[#allocation2 + $0x28] sm:$0xff] %vm22_vm0, %v1221_v33 }
  0x1a   :  { %608 = vperm.xlu1 %1203, %v538_v37   ;;  %613 = vperm.xlu0 %1202, %v539_v44   ;;  %29 = vst.msk [vmem:[#allocation2 + $0x30] sm:$0xff] %vm22_vm0, %v1221_v33  ;;  %30 = vst.msk [vmem:[#allocation2 + $0x38] sm:$0xff] %vm22_vm0, %v1221_v33 }
  0x1b   :  { %1085 = vmatpush3.bf16.msra.mxu0 %v1217_v20  ;;  %1198 = vmatpush3.bf16.msra.mxu1 %v1217_v20  ;;  %v555_v20 = vld [vmem:[%s1715_s2 + $0xd0] sm:$0xff]  ;;  %31 = vst.msk [vmem:[#allocation2 + $0x40] sm:$0xff] %vm22_vm0, %v1221_v33  ;;  %32 = vst.msk [vmem:[#allocation2 + $0x48] sm:$0xff] %vm22_vm0, %v1221_v33 }
  0x1c   :  { %1086 = vmatprep.subr.bf16.mxu0 %v1218_v23  ;;  %1191 = vmatprep.subr.bf16.mxu1 %v1218_v23  ;;  %v558_v23 = vld [vmem:[%s1715_s2 + $0xe8] sm:$0xff]  ;;  %33 = vst.msk [vmem:[#allocation2 + $0x50] sm:$0xff] %vm22_vm0, %v1221_v33  ;;  %34 = vst.msk [vmem:[#allocation2 + $0x58] sm:$0xff] %vm22_vm0, %v1221_v33 }
  0x1d   :  { %35 = vst.msk [vmem:[#allocation2 + $0x60] sm:$0xff] %vm22_vm0, %v1221_v33  ;;  %36 = vst.msk [vmem:[#allocation2 + $0x68] sm:$0xff] %vm22_vm0, %v1221_v33 }
  0x1e   :  { %618 = vperm.xlu1 %1203, %v540_v43   ;;  %623 = vperm.xlu0 %1202, %v541_v48   ;;  %37 = vst.msk [vmem:[#allocation2 + $0x70] sm:$0xff] %vm22_vm0, %v1221_v33  ;;  %38 = vst.msk [vmem:[#allocation2 + $0x78] sm:$0xff] %vm22_vm0, %v1221_v33 }
  0x1f   :  { %1087 = vmatpush3.bf16.msra.mxu0 %v1219_v24  ;;  %1199 = vmatpush3.bf16.msra.mxu1 %v1219_v24  ;;  %v557_v24 = vld [vmem:[%s1715_s2 + $0xe0] sm:$0xff]  ;;  %39 = vst.msk [vmem:[#allocation2 + $0x80] sm:$0xff] %vm22_vm0, %v1221_v33  ;;  %40 = vst.msk [vmem:[#allocation2 + $0x88] sm:$0xff] %vm22_vm0, %v1221_v33 }
  0x20   :  { %41 = vst.msk [vmem:[#allocation2 + $0x90] sm:$0xff] %vm22_vm0, %v1221_v33  ;;  %42 = vst.msk [vmem:[#allocation2 + $0x98] sm:$0xff] %vm22_vm0, %v1221_v33 }
  0x21   :  { %43 = vst.msk [vmem:[#allocation2 + $0xa0] sm:$0xff] %vm22_vm0, %v1221_v33  ;;  %44 = vst.msk [vmem:[#allocation2 + $0xa8] sm:$0xff] %vm22_vm0, %v1221_v33 }
  0x22   :  { %301 = vmatmul.mubr.bf16.vlgmr.msra.gmra.mxu0 %v140_v29  ;;  %365 = vmatmul.mubr.bf16.vlgmr.msra.gmra.mxu1 %v156_v30  ;;  %v560_v29 = vld [vmem:[%s1715_s2 + $0xf8] sm:$0xff]  ;;  %v559_v30 = vld [vmem:[%s1715_s2 + $0xf0] sm:$0xff]  ;;  %45 = vst.msk [vmem:[#allocation2 + $0xb0] sm:$0xff] %vm22_vm0, %v1221_v33  ;;  %46 = vst.msk [vmem:[#allocation2 + $0xb8] sm:$0xff] %vm22_vm0, %v1221_v33 }
  0x23   :  { %308 = vmatprep.mubr.bf16.mxu0 %v143_v31  ;;  %372 = vmatprep.mubr.bf16.mxu1 %v159_v32  ;;  %v154_v31 = vunpack.c.h.s8.bf16 %v130_v21  ;;  %v170_v32 = vunpack.c.h.s8.bf16 %v138_v22  ;;  %47 = vst.msk [vmem:[#allocation2 + $0xc0] sm:$0xff] %vm22_vm0, %v1221_v33  ;;  %48 = vst.msk [vmem:[#allocation2 + $0xc8] sm:$0xff] %vm22_vm0, %v1221_v33 }
  0x24   :  { %628 = vperm.xlu1 %1203, %v542_v47   ;;  %633 = vperm.xlu0 %1202, %v543_v54   ;;  %49 = vst.msk [vmem:[#allocation2 + $0xd0] sm:$0xff] %vm22_vm0, %v1221_v33  ;;  %50 = vst.msk [vmem:[#allocation2 + $0xd8] sm:$0xff] %vm22_vm0, %v1221_v33 }
  0x25   :  { %51 = vst.msk [vmem:[#allocation2 + $0xe0] sm:$0xff] %vm22_vm0, %v1221_v33  ;;  %52 = vst.msk [vmem:[#allocation2 + $0xe8] sm:$0xff] %vm22_vm0, %v1221_v33 }
  0x26   :  { %53 = vst.msk [vmem:[#allocation2 + $0xf0] sm:$0xff] %vm22_vm0, %v1221_v33  ;;  %54 = vst.msk [vmem:[#allocation2 + $0xf8] sm:$0xff] %vm22_vm0, %v1221_v33 }
  0x28   :  { %638 = vperm.xlu1 %1203, %v544_v53   ;;  %643 = vperm.xlu0 %1202, %v545_v58  }
  0x2a   :  { %309 = vmatmul.mubr.bf16.gmra.mxu0 %v142_v39  ;;  %373 = vmatmul.mubr.bf16.gmra.mxu1 %v158_v40 }
  0x2b   :  { %316 = vmatprep.mubr.bf16.mxu0 %v145_v41  ;;  %380 = vmatprep.mubr.bf16.mxu1 %v161_v42 }
  0x2c   :  { %648 = vperm.xlu1 %1203, %v546_v57   ;;  %653 = vperm.xlu0 %1202, %v547_v0  }
  0x30   :  { %658 = vperm.xlu1 %1203, %v548_v63   ;;  %663 = vperm.xlu0 %1202, %v549_v4  }
  0x32   :  { %317 = vmatmul.mubr.bf16.gmra.mxu0 %v144_v49  ;;  %381 = vmatmul.mubr.bf16.gmra.mxu1 %v160_v50  ;;  %v92_v49 = vld [vmem:[#allocation2] sm:$0xff] }
  0x33   :  { %324 = vmatprep.mubr.bf16.mxu0 %v147_v51  ;;  %388 = vmatprep.mubr.bf16.mxu1 %v163_v52  ;;  %v108_v51 = vld [vmem:[#allocation2 + $0x80] sm:$0xff] }
  0x34   :  { %668 = vperm.xlu1 %1203, %v550_v3   ;;  %673 = vperm.xlu0 %1202, %v551_v10  }
  0x38   :  { %678 = vperm.xlu1 %1203, %v552_v9   ;;  %683 = vperm.xlu0 %1202, %v553_v14   ;;  %v110_v9 = vld [vmem:[#allocation2 + $0x90] sm:$0xff] }
  0x3a   :  { %325 = vmatmul.mubr.bf16.gmra.mxu0 %v146_v59  ;;  %389 = vmatmul.mubr.bf16.gmra.mxu1 %v162_v60  ;;  %v93_v60 = vld [vmem:[#allocation2 + $0x8] sm:$0xff] }
  0x3b   :  { %332 = vmatprep.mubr.bf16.mxu0 %v149_v61  ;;  %396 = vmatprep.mubr.bf16.mxu1 %v165_v62  ;;  %v109_v62 = vld [vmem:[#allocation2 + $0x88] sm:$0xff] }
  0x3c   :  { %688 = vperm.xlu1 %1203, %v554_v13   ;;  %693 = vperm.xlu0 %1202, %v555_v20   ;;  %v95_v20 = vld [vmem:[#allocation2 + $0x18] sm:$0xff] }
  0x40   :  { %698 = vperm.xlu1 %1203, %v556_v19   ;;  %703 = vperm.xlu0 %1202, %v557_v24   ;;  %v111_v24 = vld [vmem:[#allocation2 + $0x98] sm:$0xff] }
  0x42   :  { %333 = vmatmul.mubr.bf16.gmra.mxu0 %v148_v5  ;;  %397 = vmatmul.mubr.bf16.gmra.mxu1 %v164_v6 }
  0x43   :  { %340 = vmatprep.mubr.bf16.mxu0 %v151_v7  ;;  %404 = vmatprep.mubr.bf16.mxu1 %v167_v8  ;;  %v94_v7 = vld [vmem:[#allocation2 + $0x10] sm:$0xff] }
  0x44   :  { %708 = vperm.xlu1 %1203, %v558_v23   ;;  %713 = vperm.xlu0 %1202, %v559_v30  }
  0x48   :  { %718 = vperm.xlu1 %1203, %v560_v29  }
  0x4a   :  { %341 = vmatmul.mubr.bf16.gmra.mxu0 %v150_v15  ;;  %405 = vmatmul.mubr.bf16.gmra.mxu1 %v166_v16 }
  0x4b   :  { %348 = vmatprep.mubr.bf16.mxu0 %v153_v17  ;;  %412 = vmatprep.mubr.bf16.mxu1 %v169_v18  ;;  %v1508_v17 = vld [vmem:[%s1716_s3] ss:$0 sm:$0xff] }
  0x52   :  { %349 = vmatmul.mubr.bf16.gmra.mxu0 %v152_v25  ;;  %413 = vmatmul.mubr.bf16.gmra.mxu1 %v168_v26 }
  0x53   :  { %356 = vmatprep.mubr.bf16.mxu0 %v155_v27  ;;  %420 = vmatprep.mubr.bf16.mxu1 %v171_v28 }
  0x5a   :  { %357 = vmatmul.mubr.bf16.gmra.mxu0 %v154_v31  ;;  %421 = vmatmul.mubr.bf16.gmra.mxu1 %v170_v32 }
  0x81   :  { %v564_v34 = vpop.permute.xlu0 %563 }
  0x85   :  { %v1471_v35 = vpop.permute.xlu1 %573  ;;  %v1473_v36 = vpop.permute.xlu0 %568 }
  0x89   :  { %v1475_v37 = vpop.permute.xlu1 %578  ;;  %v1477_v38 = vpop.permute.xlu0 %583 }
  0x8d   :  { %v1479_v39 = vpop.permute.xlu1 %588  ;;  %v1481_v40 = vpop.permute.xlu0 %593 }
  0x91   :  { %v1483_v41 = vpop.permute.xlu1 %598  ;;  %v1485_v42 = vpop.permute.xlu0 %603 }
  0x95   :  { %v1487_v43 = vpop.permute.xlu1 %608  ;;  %v1489_v44 = vpop.permute.xlu0 %613 }
  0x99   :  { %v1491_v45 = vpop.permute.xlu1 %618  ;;  %v1493_v48 = vpop.permute.xlu0 %623 }
  0x9f   :  { %v1495_v57 = vpop.permute.xlu1 %628  ;;  %v1497_v0 = vpop.permute.xlu0 %633 }
  0xa3   :  { %v1501_v11 = vpop.permute.xlu1 %638  ;;  %v644_v16 = vpop.permute.xlu0 %643 }
  0xa7   :  { %v649_v32 = vpop.permute.xlu1 %648 }
  0xe2   :  { %v1088_v46 = vpop.f32.mrf.mxu0  ;;  %v1136_v47 = vpop.f32.mrf.mxu1 }
  0xe4   :  { %v1089_v50 = vpop.f32.mrf.mxu0  ;;  %v1137_v52 = vpop.f32.mrf.mxu1 }
  0xe5   :  { %v1090_v53 = vadd.f32 %v1089_v50, %v1088_v46  ;;  %v1138_v54 = vadd.f32 %v1137_v52, %v1136_v47 }
  0xe6   :  { %v1091_v55 = vpop.f32.mrf.mxu0  ;;  %v1139_v56 = vpop.f32.mrf.mxu1 }
  0xe7   :  { %v429_v58 = vadd.f32 %v1090_v53, %v92_v49  ;;  %v445_v59 = vadd.f32 %v1138_v54, %v108_v51 }
  0xe8   :  { %v1092_v61 = vpop.f32.mrf.mxu0  ;;  %v1140_v63 = vpop.f32.mrf.mxu1 }
  0xe9   :  { %462 = vst.msk [vmem:[#allocation2] sm:$0xff] %vm22_vm0, %v429_v58  ;;  %478 = vst.msk [vmem:[#allocation2 + $0x80] sm:$0xff] %vm22_vm0, %v445_v59  ;;  %v1093_v1 = vadd.f32 %v1092_v61, %v1091_v55  ;;  %v1141_v2 = vadd.f32 %v1140_v63, %v1139_v56  ;;  %v96_v58 = vld [vmem:[#allocation2 + $0x20] sm:$0xff] }
  0xea   :  { %v1094_v3 = vpop.f32.mrf.mxu0  ;;  %v1142_v4 = vpop.f32.mrf.mxu1  ;;  %v112_v59 = vld [vmem:[#allocation2 + $0xa0] sm:$0xff] }
  0xeb   :  { %v430_v5 = vadd.f32 %v1093_v1, %v93_v60  ;;  %v446_v6 = vadd.f32 %v1141_v2, %v109_v62  ;;  %v654_v1 = vpop.permute.xlu0 %653 }
  0xec   :  { %v1095_v8 = vpop.f32.mrf.mxu0  ;;  %v1143_v10 = vpop.f32.mrf.mxu1 }
  0xed   :  { %463 = vst.msk [vmem:[#allocation2 + $0x8] sm:$0xff] %vm22_vm0, %v430_v5  ;;  %479 = vst.msk [vmem:[#allocation2 + $0x88] sm:$0xff] %vm22_vm0, %v446_v6  ;;  %v1096_v12 = vadd.f32 %v1095_v8, %v1094_v3  ;;  %v1144_v13 = vadd.f32 %v1143_v10, %v1142_v4 }
  0xee   :  { %v1097_v14 = vpop.f32.mrf.mxu0  ;;  %v1145_v15 = vpop.f32.mrf.mxu1 }
  0xef   :  { %v431_v18 = vadd.f32 %v1096_v12, %v94_v7  ;;  %v447_v19 = vadd.f32 %v1144_v13, %v110_v9 }
  0xf0   :  { %v497_v21 = vld [vmem:[#allocation2] sm:$0xff]  ;;  %v1098_v23 = vpop.f32.mrf.mxu0  ;;  %v1146_v25 = vpop.f32.mrf.mxu1 }
  0xf1   :  { %v513_v22 = vld [vmem:[#allocation2 + $0x80] sm:$0xff]  ;;  %v721_v26 = vmul.f32 %v564_v34, %v497_v21  ;;  %464 = vst.msk [vmem:[#allocation2 + $0x10] sm:$0xff] %vm22_vm0, %v431_v18  ;;  %480 = vst.msk [vmem:[#allocation2 + $0x90] sm:$0xff] %vm22_vm0, %v447_v19  ;;  %v1099_v28 = vadd.f32 %v1098_v23, %v1097_v14  ;;  %v1147_v29 = vadd.f32 %v1146_v25, %v1145_v15  ;;  %v113_v18 = vld [vmem:[#allocation2 + $0xa8] sm:$0xff]  ;;  %v659_v23 = vpop.permute.xlu1 %658 }
  0xf2   :  { %v737_v27 = vmul.f32 %v644_v16, %v513_v22  ;;  %v1100_v30 = vpop.f32.mrf.mxu0  ;;  %v1148_v31 = vpop.f32.mrf.mxu1  ;;  %v97_v16 = vld [vmem:[#allocation2 + $0x28] sm:$0xff] }
  0xf3   :  { %v760_v33 = vadd.f32 %v1508_v17, %v721_v26  ;;  %v432_v47 = vadd.f32 %v1099_v28, %v95_v20  ;;  %v448_v49 = vadd.f32 %v1147_v29, %v111_v24 }
  0xf4   :  { %v776_v46 = vadd.f32 %v1508_v17, %v737_v27  ;;  %v498_v50 = vld [vmem:[#allocation2 + $0x8] sm:$0xff]  ;;  %v1101_v52 = vpop.f32.mrf.mxu0  ;;  %v1149_v34 = vpop.f32.mrf.mxu1 }
  0xf5   :  { %v514_v51 = vld [vmem:[#allocation2 + $0x88] sm:$0xff]  ;;  %v792_v53 = vmax.f32 %v760_v33, 0.0  ;;  %v722_v55 = vmul.f32 %v1473_v36, %v498_v50  ;;  %465 = vst.msk [vmem:[#allocation2 + $0x18] sm:$0xff] %vm22_vm0, %v432_v47  ;;  %481 = vst.msk [vmem:[#allocation2 + $0x98] sm:$0xff] %vm22_vm0, %v448_v49  ;;  %v1102_v60 = vadd.f32 %v1101_v52, %v1100_v30  ;;  %v1150_v61 = vadd.f32 %v1149_v34, %v1148_v31  ;;  %v98_v50 = vld [vmem:[#allocation2 + $0x30] sm:$0xff] }
  0xf6   :  { %v808_v54 = vmax.f32 %v776_v46, 0.0  ;;  %v738_v56 = vmul.f32 %v649_v32, %v514_v51  ;;  %v1103_v62 = vpop.f32.mrf.mxu0  ;;  %v1151_v63 = vpop.f32.mrf.mxu1  ;;  %v114_v51 = vld [vmem:[#allocation2 + $0xb0] sm:$0xff] }
  0xf7   :  { %v1040_v2 = vpack.c.bf16 %v792_v53, %v792_v53  ;;  %v761_v4 = vadd.f32 %v1508_v17, %v722_v55  ;;  %v433_v7 = vadd.f32 %v1102_v60, %v96_v58  ;;  %v449_v8 = vadd.f32 %v1150_v61, %v112_v59 }
  0xf8   :  { %v1056_v3 = vpack.c.bf16 %v808_v54, %v808_v54  ;;  %v777_v5 = vadd.f32 %v1508_v17, %v738_v56  ;;  %v499_v36 = vld [vmem:[#allocation2 + $0x10] sm:$0xff]  ;;  %v1104_v9 = vpop.f32.mrf.mxu0  ;;  %v1152_v10 = vpop.f32.mrf.mxu1 }
  0xf9   :  { %v515_v6 = vld [vmem:[#allocation2 + $0x90] sm:$0xff]  ;;  %953 = vst.msk [vmem:[%s1717_s4] sm:$0xf] %vm952_vm1, %v1040_v2  ;;  %v793_v12 = vmax.f32 %v761_v4, 0.0  ;;  %v723_v14 = vmul.f32 %v1471_v35, %v499_v36  ;;  %v1105_v19 = vadd.f32 %v1104_v9, %v1103_v62  ;;  %v1153_v20 = vadd.f32 %v1152_v10, %v1151_v63  ;;  %v115_v63 = vld [vmem:[#allocation2 + $0xb8] sm:$0xff]  ;;  %v664_v2 = vpop.permute.xlu0 %663 }
  0xfa   :  { %969 = vst.msk [vmem:[%s1717_s4 + $0x40] sm:$0xf] %vm952_vm1, %v1056_v3  ;;  %v809_v13 = vmax.f32 %v777_v5, 0.0  ;;  %v739_v15 = vmul.f32 %v654_v1, %v515_v6  ;;  %v1106_v21 = vpop.f32.mrf.mxu0  ;;  %v1154_v22 = vpop.f32.mrf.mxu1 }
  0xfb   :  { %466 = vst.msk [vmem:[#allocation2 + $0x20] sm:$0xff] %vm22_vm0, %v433_v7  ;;  %482 = vst.msk [vmem:[#allocation2 + $0xa0] sm:$0xff] %vm22_vm0, %v449_v8  ;;  %v1041_v24 = vpack.c.bf16 %v793_v12, %v793_v12  ;;  %v762_v26 = vadd.f32 %v1508_v17, %v723_v14  ;;  %v434_v29 = vadd.f32 %v1105_v19, %v97_v16 }
  0xfc   :  { %v1057_v25 = vpack.c.bf16 %v809_v13, %v809_v13  ;;  %v778_v27 = vadd.f32 %v1508_v17, %v739_v15  ;;  %v500_v28 = vld [vmem:[#allocation2 + $0x18] sm:$0xff]  ;;  %v450_v30 = vadd.f32 %v1153_v20, %v113_v18  ;;  %v1107_v31 = vpop.f32.mrf.mxu0  ;;  %v1155_v32 = vpop.f32.mrf.mxu1  ;;  %v100_v20 = vld [vmem:[#allocation2 + $0x40] sm:$0xff] }
  0xfd   :  { %v516_v35 = vld [vmem:[#allocation2 + $0x98] sm:$0xff]  ;;  %954 = vst.msk [vmem:[%s1717_s4 + $0x4] sm:$0xf] %vm952_vm1, %v1041_v24  ;;  %v794_v33 = vmax.f32 %v762_v26, 0.0  ;;  %v724_v47 = vmul.f32 %v1475_v37, %v500_v28  ;;  %v1108_v52 = vadd.f32 %v1107_v31, %v1106_v21  ;;  %v1156_v34 = vadd.f32 %v1155_v32, %v1154_v22  ;;  %v116_v22 = vld [vmem:[#allocation2 + $0xc0] sm:$0xff] }
  0xfe   :  { %970 = vst.msk [vmem:[%s1717_s4 + $0x44] sm:$0xf] %vm952_vm1, %v1057_v25  ;;  %v810_v46 = vmax.f32 %v778_v27, 0.0  ;;  %v740_v49 = vmul.f32 %v659_v23, %v516_v35  ;;  %v1109_v53 = vpop.f32.mrf.mxu0  ;;  %v1157_v54 = vpop.f32.mrf.mxu1  ;;  %v99_v37 = vld [vmem:[#allocation2 + $0x38] sm:$0xff] }
  0xff   :  { %467 = vst.msk [vmem:[#allocation2 + $0x28] sm:$0xff] %vm22_vm0, %v434_v29  ;;  %483 = vst.msk [vmem:[#allocation2 + $0xa8] sm:$0xff] %vm22_vm0, %v450_v30  ;;  %v1042_v55 = vpack.c.bf16 %v794_v33, %v794_v33  ;;  %v763_v58 = vadd.f32 %v1508_v17, %v724_v47  ;;  %v435_v60 = vadd.f32 %v1108_v52, %v98_v50  ;;  %v101_v52 = vld [vmem:[#allocation2 + $0x48] sm:$0xff] }
 0x100   :  { %v1058_v56 = vpack.c.bf16 %v810_v46, %v810_v46  ;;  %v779_v59 = vadd.f32 %v1508_v17, %v740_v49  ;;  %v451_v61 = vadd.f32 %v1156_v34, %v114_v51  ;;  %v1110_v62 = vpop.f32.mrf.mxu0  ;;  %v1158_v1 = vpop.f32.mrf.mxu1 }
 0x101   :  { %955 = vst.msk [vmem:[%s1717_s4 + $0x8] sm:$0xf] %vm952_vm1, %v1042_v55  ;;  %v795_v3 = vmax.f32 %v763_v58, 0.0  ;;  %v1111_v6 = vadd.f32 %v1110_v62, %v1109_v53  ;;  %v1159_v7 = vadd.f32 %v1158_v1, %v1157_v54  ;;  %v117_v53 = vld [vmem:[#allocation2 + $0xc8] sm:$0xff]  ;;  %v674_v55 = vpop.permute.xlu0 %673 }
 0x102   :  { %971 = vst.msk [vmem:[%s1717_s4 + $0x48] sm:$0xf] %vm952_vm1, %v1058_v56  ;;  %v811_v4 = vmax.f32 %v779_v59, 0.0  ;;  %v501_v5 = vld [vmem:[#allocation2 + $0x20] sm:$0xff]  ;;  %v1112_v10 = vpop.f32.mrf.mxu0  ;;  %v1160_v12 = vpop.f32.mrf.mxu1 }
 0x103   :  { %v517_v36 = vld [vmem:[#allocation2 + $0xa0] sm:$0xff]  ;;  %v725_v8 = vmul.f32 %v1477_v38, %v501_v5  ;;  %468 = vst.msk [vmem:[#allocation2 + $0x30] sm:$0xff] %vm22_vm0, %v435_v60  ;;  %484 = vst.msk [vmem:[#allocation2 + $0xb0] sm:$0xff] %vm22_vm0, %v451_v61  ;;  %v1043_v13 = vpack.c.bf16 %v795_v3, %v795_v3  ;;  %v436_v15 = vadd.f32 %v1111_v6, %v99_v37  ;;  %v669_v38 = vpop.permute.xlu1 %668  ;;  %v102_v5 = vld [vmem:[#allocation2 + $0x50] sm:$0xff] }
 0x104   :  { %v741_v9 = vmul.f32 %v664_v2, %v517_v36  ;;  %v1059_v14 = vpack.c.bf16 %v811_v4, %v811_v4  ;;  %v452_v16 = vadd.f32 %v1159_v7, %v115_v63  ;;  %v1113_v21 = vpop.f32.mrf.mxu0  ;;  %v1161_v23 = vpop.f32.mrf.mxu1 }
 0x105   :  { %v764_v18 = vadd.f32 %v1508_v17, %v725_v8  ;;  %956 = vst.msk [vmem:[%s1717_s4 + $0xc] sm:$0xf] %vm952_vm1, %v1043_v13  ;;  %v1114_v26 = vadd.f32 %v1113_v21, %v1112_v10  ;;  %v1162_v27 = vadd.f32 %v1161_v23, %v1160_v12  ;;  %v118_v13 = vld [vmem:[#allocation2 + $0xd0] sm:$0xff] }
 0x106   :  { %v780_v19 = vadd.f32 %v1508_v17, %v741_v9  ;;  %972 = vst.msk [vmem:[%s1717_s4 + $0x4c] sm:$0xf] %vm952_vm1, %v1059_v14  ;;  %v502_v24 = vld [vmem:[#allocation2 + $0x28] sm:$0xff]  ;;  %v1115_v31 = vpop.f32.mrf.mxu0  ;;  %v1163_v32 = vpop.f32.mrf.mxu1 }
 0x107   :  { %v518_v25 = vld [vmem:[#allocation2 + $0xa8] sm:$0xff]  ;;  %469 = vst.msk [vmem:[#allocation2 + $0x38] sm:$0xff] %vm22_vm0, %v436_v15  ;;  %485 = vst.msk [vmem:[#allocation2 + $0xb8] sm:$0xff] %vm22_vm0, %v452_v16  ;;  %v796_v28 = vmax.f32 %v764_v18, 0.0  ;;  %v726_v29 = vmul.f32 %v1479_v39, %v502_v24  ;;  %v437_v33 = vadd.f32 %v1114_v26, %v100_v20  ;;  %v453_v46 = vadd.f32 %v1162_v27, %v116_v22  ;;  %v679_v2 = vpop.permute.xlu1 %678  ;;  %v684_v22 = vpop.permute.xlu0 %683 }
 0x108   :  { %v812_v35 = vmax.f32 %v780_v19, 0.0  ;;  %v742_v30 = vmul.f32 %v669_v38, %v518_v25  ;;  %v1116_v34 = vpop.f32.mrf.mxu0  ;;  %v1164_v54 = vpop.f32.mrf.mxu1 }
 0x109   :  { %v1044_v47 = vpack.c.bf16 %v796_v28, %v796_v28  ;;  %v765_v50 = vadd.f32 %v1508_v17, %v726_v29  ;;  %470 = vst.msk [vmem:[#allocation2 + $0x40] sm:$0xff] %vm22_vm0, %v437_v33  ;;  %486 = vst.msk [vmem:[#allocation2 + $0xc0] sm:$0xff] %vm22_vm0, %v453_v46  ;;  %v1117_v39 = vadd.f32 %v1116_v34, %v1115_v31 }
 0x10a   :  { %v1060_v49 = vpack.c.bf16 %v812_v35, %v812_v35  ;;  %v781_v51 = vadd.f32 %v1508_v17, %v742_v30  ;;  %v503_v56 = vld [vmem:[#allocation2 + $0x30] sm:$0xff]  ;;  %v1165_v59 = vadd.f32 %v1164_v54, %v1163_v32  ;;  %v1118_v63 = vpop.f32.mrf.mxu0  ;;  %v1166_v1 = vpop.f32.mrf.mxu1 }
 0x10b   :  { %v519_v58 = vld [vmem:[#allocation2 + $0xb0] sm:$0xff]  ;;  %957 = vst.msk [vmem:[%s1717_s4 + $0x10] sm:$0xf] %vm952_vm1, %v1044_v47  ;;  %v797_v60 = vmax.f32 %v765_v50, 0.0  ;;  %v727_v37 = vmul.f32 %v1481_v40, %v503_v56  ;;  %v438_v3 = vadd.f32 %v1117_v39, %v101_v52  ;;  %v103_v47 = vld [vmem:[#allocation2 + $0x58] sm:$0xff]  ;;  %v689_v34 = vpop.permute.xlu1 %688 }
 0x10c   :  { %973 = vst.msk [vmem:[%s1717_s4 + $0x50] sm:$0xf] %vm952_vm1, %v1060_v49  ;;  %v813_v61 = vmax.f32 %v781_v51, 0.0  ;;  %v743_v62 = vmul.f32 %v674_v55, %v519_v58  ;;  %v454_v4 = vadd.f32 %v1165_v59, %v117_v53  ;;  %v1119_v12 = vpop.f32.mrf.mxu0  ;;  %v1167_v14 = vpop.f32.mrf.mxu1  ;;  %v119_v49 = vld [vmem:[#allocation2 + $0xd8] sm:$0xff] }
 0x10d   :  { %v1045_v36 = vpack.c.bf16 %v797_v60, %v797_v60  ;;  %v766_v7 = vadd.f32 %v1508_v17, %v727_v37  ;;  %471 = vst.msk [vmem:[#allocation2 + $0x48] sm:$0xff] %vm22_vm0, %v438_v3  ;;  %v1120_v16 = vadd.f32 %v1119_v12, %v1118_v63  ;;  %v1168_v18 = vadd.f32 %v1167_v14, %v1166_v1  ;;  %v104_v3 = vld [vmem:[#allocation2 + $0x60] sm:$0xff] }
 0x10e   :  { %v1061_v6 = vpack.c.bf16 %v813_v61, %v813_v61  ;;  %v782_v8 = vadd.f32 %v1508_v17, %v743_v62  ;;  %v504_v9 = vld [vmem:[#allocation2 + $0x38] sm:$0xff]  ;;  %487 = vst.msk [vmem:[#allocation2 + $0xc8] sm:$0xff] %vm22_vm0, %v454_v4  ;;  %v1169_v21 = vpop.f32.mrf.mxu1  ;;  %v120_v4 = vld [vmem:[#allocation2 + $0xe0] sm:$0xff] }
 0x10f   :  { %v520_v10 = vld [vmem:[#allocation2 + $0xb8] sm:$0xff]  ;;  %v728_v40 = vmul.f32 %v1483_v41, %v504_v9  ;;  %958 = vst.msk [vmem:[%s1717_s4 + $0x14] sm:$0xf] %vm952_vm1, %v1045_v36  ;;  %v798_v19 = vmax.f32 %v766_v7, 0.0  ;;  %v1121_v41 = vpop.f32.mrf.mxu0  ;;  %v439_v24 = vadd.f32 %v1120_v16, %v102_v5  ;;  %v455_v25 = vadd.f32 %v1168_v18, %v118_v13 }
 0x110   :  { %v744_v15 = vmul.f32 %v679_v2, %v520_v10  ;;  %974 = vst.msk [vmem:[%s1717_s4 + $0x54] sm:$0xf] %vm952_vm1, %v1061_v6  ;;  %v814_v20 = vmax.f32 %v782_v8, 0.0  ;;  %v505_v28 = vld [vmem:[#allocation2 + $0x40] sm:$0xff]  ;;  %v1170_v30 = vpop.f32.mrf.mxu1  ;;  %v694_v8 = vpop.permute.xlu0 %693 }
 0x111   :  { %v767_v23 = vadd.f32 %v1508_v17, %v728_v40  ;;  %v1046_v26 = vpack.c.bf16 %v798_v19, %v798_v19  ;;  %v521_v35 = vld [vmem:[#allocation2 + $0xc0] sm:$0xff]  ;;  %v1122_v29 = vpop.f32.mrf.mxu0  ;;  %v729_v33 = vmul.f32 %v1485_v42, %v505_v28  ;;  %472 = vst.msk [vmem:[#allocation2 + $0x50] sm:$0xff] %vm22_vm0, %v439_v24  ;;  %488 = vst.msk [vmem:[#allocation2 + $0xd0] sm:$0xff] %vm22_vm0, %v455_v25 }
 0x112   :  { %v783_v38 = vadd.f32 %v1508_v17, %v744_v15  ;;  %v1062_v27 = vpack.c.bf16 %v814_v20, %v814_v20  ;;  %v745_v46 = vmul.f32 %v684_v22, %v521_v35  ;;  %v1123_v50 = vadd.f32 %v1122_v29, %v1121_v41  ;;  %v1172_v52 = vpop.f32.mrf.mxu1  ;;  %v105_v22 = vld [vmem:[#allocation2 + $0x68] sm:$0xff] }
 0x113   :  { %v799_v31 = vmax.f32 %v767_v23, 0.0  ;;  %959 = vst.msk [vmem:[%s1717_s4 + $0x18] sm:$0xf] %vm952_vm1, %v1046_v26  ;;  %v1171_v51 = vadd.f32 %v1170_v30, %v1169_v21  ;;  %v1124_v42 = vpop.f32.mrf.mxu0  ;;  %v768_v55 = vadd.f32 %v1508_v17, %v729_v33  ;;  %v121_v23 = vld [vmem:[#allocation2 + $0xe8] sm:$0xff]  ;;  %v122_v33 = vld [vmem:[#allocation2 + $0xf0] sm:$0xff] }
 0x114   :  { %v815_v32 = vmax.f32 %v783_v38, 0.0  ;;  %975 = vst.msk [vmem:[%s1717_s4 + $0x58] sm:$0xf] %vm952_vm1, %v1062_v27  ;;  %v784_v56 = vadd.f32 %v1508_v17, %v745_v46  ;;  %v506_v58 = vld [vmem:[#allocation2 + $0x48] sm:$0xff]  ;;  %v440_v59 = vadd.f32 %v1123_v50, %v103_v47  ;;  %v1173_v37 = vpop.f32.mrf.mxu1  ;;  %v699_v47 = vpop.permute.xlu1 %698 }
 0x115   :  { %v1047_v53 = vpack.c.bf16 %v799_v31, %v799_v31  ;;  %v522_v39 = vld [vmem:[#allocation2 + $0xc8] sm:$0xff]  ;;  %v456_v60 = vadd.f32 %v1171_v51, %v119_v49  ;;  %v1125_v61 = vpop.f32.mrf.mxu0  ;;  %v800_v62 = vmax.f32 %v768_v55, 0.0  ;;  %v730_v1 = vmul.f32 %v1487_v43, %v506_v58 }
 0x116   :  { %v1063_v54 = vpack.c.bf16 %v815_v32, %v815_v32  ;;  %v816_v63 = vmax.f32 %v784_v56, 0.0  ;;  %v746_v2 = vmul.f32 %v689_v34, %v522_v39  ;;  %473 = vst.msk [vmem:[#allocation2 + $0x58] sm:$0xff] %vm22_vm0, %v440_v59  ;;  %v1126_v5 = vadd.f32 %v1125_v61, %v1124_v42  ;;  %v1175_v7 = vpop.f32.mrf.mxu1 }
 0x117   :  { %960 = vst.msk [vmem:[%s1717_s4 + $0x1c] sm:$0xf] %vm952_vm1, %v1047_v53  ;;  %v1174_v36 = vadd.f32 %v1173_v37, %v1172_v52  ;;  %v1127_v6 = vpop.f32.mrf.mxu0  ;;  %v1048_v9 = vpack.c.bf16 %v800_v62, %v800_v62  ;;  %v769_v12 = vadd.f32 %v1508_v17, %v730_v1  ;;  %v107_v62 = vld [vmem:[#allocation2 + $0x78] sm:$0xff] }
 0x118   :  { %976 = vst.msk [vmem:[%s1717_s4 + $0x5c] sm:$0xf] %vm952_vm1, %v1063_v54  ;;  %v1064_v10 = vpack.c.bf16 %v816_v63, %v816_v63  ;;  %v785_v13 = vadd.f32 %v1508_v17, %v746_v2  ;;  %v507_v14 = vld [vmem:[#allocation2 + $0x50] sm:$0xff]  ;;  %v441_v40 = vadd.f32 %v1126_v5, %v104_v3  ;;  %v1176_v18 = vpop.f32.mrf.mxu1  ;;  %v123_v1 = vld [vmem:[#allocation2 + $0xf8] sm:$0xff] }
 0x119   :  { %489 = vst.msk [vmem:[#allocation2 + $0xd8] sm:$0xff] %vm22_vm0, %v456_v60  ;;  %v523_v43 = vld [vmem:[#allocation2 + $0xd0] sm:$0xff]  ;;  %v457_v15 = vadd.f32 %v1174_v36, %v120_v4  ;;  %v1128_v16 = vpop.f32.mrf.mxu0  ;;  %v801_v19 = vmax.f32 %v769_v12, 0.0  ;;  %v731_v41 = vmul.f32 %v1489_v44, %v507_v14  ;;  %v1177_v24 = vadd.f32 %v1176_v18, %v1175_v7 }
 0x11a   :  { %961 = vst.msk [vmem:[%s1717_s4 + $0x20] sm:$0xf] %vm952_vm1, %v1048_v9  ;;  %977 = vst.msk [vmem:[%s1717_s4 + $0x60] sm:$0xf] %vm952_vm1, %v1064_v10  ;;  %v817_v20 = vmax.f32 %v785_v13, 0.0  ;;  %v747_v21 = vmul.f32 %v694_v8, %v523_v43  ;;  %v1129_v38 = vadd.f32 %v1128_v16, %v1127_v6  ;;  %v1178_v26 = vpop.f32.mrf.mxu1  ;;  %v106_v44 = vld [vmem:[#allocation2 + $0x70] sm:$0xff] }
 0x11b   :  { %474 = vst.msk [vmem:[#allocation2 + $0x60] sm:$0xff] %vm22_vm0, %v441_v40  ;;  %490 = vst.msk [vmem:[#allocation2 + $0xe0] sm:$0xff] %vm22_vm0, %v457_v15  ;;  %v1130_v25 = vpop.f32.mrf.mxu0  ;;  %v1049_v27 = vpack.c.bf16 %v801_v19, %v801_v19  ;;  %v770_v35 = vadd.f32 %v1508_v17, %v731_v41  ;;  %v458_v31 = vadd.f32 %v1177_v24, %v121_v23  ;;  %v709_v15 = vpop.permute.xlu1 %708 }
 0x11c   :  { %v1065_v28 = vpack.c.bf16 %v817_v20, %v817_v20  ;;  %v786_v29 = vadd.f32 %v1508_v17, %v747_v21  ;;  %v442_v30 = vadd.f32 %v1129_v38, %v105_v22  ;;  %v1179_v46 = vpop.f32.mrf.mxu1 }
 0x11d   :  { %v1131_v32 = vpop.f32.mrf.mxu0  ;;  %962 = vst.msk [vmem:[%s1717_s4 + $0x24] sm:$0xf] %vm952_vm1, %v1049_v27  ;;  %v802_v49 = vmax.f32 %v770_v35, 0.0  ;;  %v508_v51 = vld [vmem:[#allocation2 + $0x58] sm:$0xff]  ;;  %v1180_v34 = vadd.f32 %v1179_v46, %v1178_v26 }
 0x11e   :  { %978 = vst.msk [vmem:[%s1717_s4 + $0x64] sm:$0xf] %vm952_vm1, %v1065_v28  ;;  %v818_v50 = vmax.f32 %v786_v29, 0.0  ;;  %v1132_v52 = vadd.f32 %v1131_v32, %v1130_v25  ;;  %v732_v53 = vmul.f32 %v1491_v45, %v508_v51  ;;  %v1181_v56 = vpop.f32.mrf.mxu1  ;;  %v704_v45 = vpop.permute.xlu0 %703 }
 0x11f   :  { %475 = vst.msk [vmem:[#allocation2 + $0x68] sm:$0xff] %vm22_vm0, %v442_v30  ;;  %491 = vst.msk [vmem:[#allocation2 + $0xe8] sm:$0xff] %vm22_vm0, %v458_v31  ;;  %v1133_v55 = vpop.f32.mrf.mxu0  ;;  %v1050_v58 = vpack.c.bf16 %v802_v49, %v802_v49  ;;  %v459_v60 = vadd.f32 %v1180_v34, %v122_v33  ;;  %v719_v31 = vpop.permute.xlu1 %718 }
 0x120   :  { %v524_v42 = vld [vmem:[#allocation2 + $0xd8] sm:$0xff]  ;;  %v1066_v39 = vpack.c.bf16 %v818_v50, %v818_v50  ;;  %v443_v59 = vadd.f32 %v1132_v52, %v106_v44  ;;  %v771_v61 = vadd.f32 %v1508_v17, %v732_v53  ;;  %v1182_v2 = vpop.f32.mrf.mxu1 }
 0x121   :  { %v748_v54 = vmul.f32 %v699_v47, %v524_v42  ;;  %v1134_v63 = vpop.f32.mrf.mxu0  ;;  %963 = vst.msk [vmem:[%s1717_s4 + $0x28] sm:$0xf] %vm952_vm1, %v1050_v58  ;;  %v1183_v36 = vadd.f32 %v1182_v2, %v1181_v56 }
 0x122   :  { %979 = vst.msk [vmem:[%s1717_s4 + $0x68] sm:$0xf] %vm952_vm1, %v1066_v39  ;;  %v509_v3 = vld [vmem:[#allocation2 + $0x60] sm:$0xff]  ;;  %v1135_v5 = vadd.f32 %v1134_v63, %v1133_v55  ;;  %v803_v6 = vmax.f32 %v771_v61, 0.0  ;;  %v714_v21 = vpop.permute.xlu0 %713 }
 0x123   :  { %v787_v37 = vadd.f32 %v1508_v17, %v748_v54  ;;  %v525_v4 = vld [vmem:[#allocation2 + $0xe0] sm:$0xff]  ;;  %476 = vst.msk [vmem:[#allocation2 + $0x70] sm:$0xff] %vm22_vm0, %v443_v59  ;;  %492 = vst.msk [vmem:[#allocation2 + $0xf0] sm:$0xff] %vm22_vm0, %v459_v60  ;;  %v733_v8 = vmul.f32 %v1493_v48, %v509_v3  ;;  %v460_v12 = vadd.f32 %v1183_v36, %v123_v1 }
 0x124   :  { %v749_v9 = vmul.f32 %v704_v45, %v525_v4  ;;  %v444_v10 = vadd.f32 %v1135_v5, %v107_v62  ;;  %v1051_v13 = vpack.c.bf16 %v803_v6, %v803_v6 }
 0x125   :  { %v819_v7 = vmax.f32 %v787_v37, 0.0  ;;  %v772_v43 = vadd.f32 %v1508_v17, %v733_v8  ;;  %493 = vst.msk [vmem:[#allocation2 + $0xf8] sm:$0xff] %vm22_vm0, %v460_v12 }
 0x126   :  { %v788_v40 = vadd.f32 %v1508_v17, %v749_v9  ;;  %v510_v16 = vld [vmem:[#allocation2 + $0x68] sm:$0xff]  ;;  %477 = vst.msk [vmem:[#allocation2 + $0x78] sm:$0xff] %vm22_vm0, %v444_v10 }
 0x127   :  { %v1067_v14 = vpack.c.bf16 %v819_v7, %v819_v7  ;;  %v526_v18 = vld [vmem:[#allocation2 + $0xe8] sm:$0xff]  ;;  %964 = vst.msk [vmem:[%s1717_s4 + $0x2c] sm:$0xf] %vm952_vm1, %v1051_v13  ;;  %v804_v48 = vmax.f32 %v772_v43, 0.0  ;;  %v734_v20 = vmul.f32 %v1495_v57, %v510_v16 }
 0x128   :  { %v820_v19 = vmax.f32 %v788_v40, 0.0  ;;  %v750_v41 = vmul.f32 %v709_v15, %v526_v18 }
 0x129   :  { %980 = vst.msk [vmem:[%s1717_s4 + $0x6c] sm:$0xf] %vm952_vm1, %v1067_v14  ;;  %v1052_v22 = vpack.c.bf16 %v804_v48, %v804_v48  ;;  %v773_v38 = vadd.f32 %v1508_v17, %v734_v20 }
 0x12a   :  { %v1068_v23 = vpack.c.bf16 %v820_v19, %v820_v19  ;;  %v789_v24 = vadd.f32 %v1508_v17, %v750_v41  ;;  %v511_v25 = vld [vmem:[#allocation2 + $0x70] sm:$0xff] }
 0x12b   :  { %v527_v26 = vld [vmem:[#allocation2 + $0xf0] sm:$0xff]  ;;  %v735_v27 = vmul.f32 %v1497_v0, %v511_v25  ;;  %965 = vst.msk [vmem:[%s1717_s4 + $0x30] sm:$0xf] %vm952_vm1, %v1052_v22  ;;  %v805_v57 = vmax.f32 %v773_v38, 0.0 }
 0x12c   :  { %v751_v28 = vmul.f32 %v714_v21, %v527_v26  ;;  %981 = vst.msk [vmem:[%s1717_s4 + $0x70] sm:$0xf] %vm952_vm1, %v1068_v23  ;;  %v821_v35 = vmax.f32 %v789_v24, 0.0  ;;  %v528_v33 = vld [vmem:[#allocation2 + $0xf8] sm:$0xff] }
 0x12d   :  { %v774_v29 = vadd.f32 %v1508_v17, %v735_v27  ;;  %v1053_v44 = vpack.c.bf16 %v805_v57, %v805_v57  ;;  %v512_v32 = vld [vmem:[#allocation2 + $0x78] sm:$0xff]  ;;  %v752_v50 = vmul.f32 %v719_v31, %v528_v33 }
 0x12e   :  { %v790_v30 = vadd.f32 %v1508_v17, %v751_v28  ;;  %v1069_v0 = vpack.c.bf16 %v821_v35, %v821_v35  ;;  %v736_v49 = vmul.f32 %v1501_v11, %v512_v32 }
 0x12f   :  { %v806_v46 = vmax.f32 %v774_v29, 0.0  ;;  %966 = vst.msk [vmem:[%s1717_s4 + $0x34] sm:$0xf] %vm952_vm1, %v1053_v44  ;;  %v791_v34 = vadd.f32 %v1508_v17, %v752_v50 }
 0x130   :  { %v822_v47 = vmax.f32 %v790_v30, 0.0  ;;  %982 = vst.msk [vmem:[%s1717_s4 + $0x74] sm:$0xf] %vm952_vm1, %v1069_v0  ;;  %v775_v52 = vadd.f32 %v1508_v17, %v736_v49 }
 0x131   :  { %v1054_v51 = vpack.c.bf16 %v806_v46, %v806_v46  ;;  %v823_v53 = vmax.f32 %v791_v34, 0.0 }
 0x132   :  { %v1070_v42 = vpack.c.bf16 %v822_v47, %v822_v47  ;;  %v807_v11 = vmax.f32 %v775_v52, 0.0 }
 0x133   :  { %967 = vst.msk [vmem:[%s1717_s4 + $0x38] sm:$0xf] %vm952_vm1, %v1054_v51  ;;  %v1071_v55 = vpack.c.bf16 %v823_v53, %v823_v53 }
 0x134   :  { %983 = vst.msk [vmem:[%s1717_s4 + $0x78] sm:$0xf] %vm952_vm1, %v1070_v42  ;;  %v1055_v54 = vpack.c.bf16 %v807_v11, %v807_v11 }
 0x135   :  { %984 = vst.msk [vmem:[%s1717_s4 + $0x7c] sm:$0xf] %vm952_vm1, %v1071_v55 }
 0x136   :  { %968 = vst.msk [vmem:[%s1717_s4 + $0x3c] sm:$0xf] %vm952_vm1, %v1055_v54 }

// kernel: url_gnn_forward.3
= control target key start
LH: loop header
LB: loop body
LE: loop exit
PB: predicated region body
PF: predicated region fallthrough
CT: control target
= control target key end

     0   :  { %v2044_v1 = vmov 0   ;;  %vm28_vm0 = vcmask 523264   ;;  %vm1528_vm1 = vcmask 519168   ;;  %s2734_s1 = inlined_call_operand.vmem [shape: bf16[256,64], index: 1, kind: input, shape index: {}]   ;;  %s2735_s0 = inlined_call_operand.vmem [shape: s8[256,256], index: 0, kind: input, shape index: {}]   ;;  %s2736_s2 = inlined_call_operand.vmem [shape: f32[256,1], index: 2, kind: input, shape index: {}]   ;;  %s2737_s3 = inlined_call_operand.vmem [shape: f32[64,128], index: 3, kind: input, shape index: {}]   ;;  %s2738_s5 = inlined_call_operand.vmem [shape: f32[128,64], index: 5, kind: input, shape index: {}]   ;;  %s2739_s4 = inlined_call_operand.vmem [shape: f32[1,128], index: 4, kind: input, shape index: {}]   ;;  %s2740_s6 = inlined_call_operand.vmem [shape: bf16[256,64], index: 6, kind: output, shape index: {}]  }
   0x1   :  { %v2028_v0 = vld [vmem:[%s2734_s1 + $0x78] sm:$0xff]   ;;  %2026 = vset.pattern.permute.xlu0 %v2044_v1  ;;  %2027 = vset.pattern.permute.xlu1 %v2044_v1  ;;  %v2030_v3 = vld [vmem:[%s2734_s1 + $0x70] sm:$0xff]   ;;  %v2032_v5 = vld [vmem:[%s2734_s1 + $0x68] sm:$0xff]  }
   0x2   :  { %v2029_v2 = vld [vmem:[%s2734_s1 + $0x38] sm:$0xff]   ;;  %1680 = vmatprep.subr.bf16.mxu0 %v2028_v0  ;;  %v2031_v4 = vld [vmem:[%s2734_s1 + $0x30] sm:$0xff]   ;;  %v2033_v6 = vld [vmem:[%s2734_s1 + $0x28] sm:$0xff]  }
   0x3   :  { %1681 = vmatpush3.bf16.msra.mxu0 %v2029_v2  ;;  %v2034_v7 = vld [vmem:[%s2734_s1 + $0x60] sm:$0xff]   ;;  %v2036_v9 = vld [vmem:[%s2734_s1 + $0x58] sm:$0xff]   ;;  %v2038_v11 = vld [vmem:[%s2734_s1 + $0x50] sm:$0xff]  }
   0x4   :  { %1682 = vmatprep.subr.bf16.mxu0 %v2030_v3  ;;  %v2035_v8 = vld [vmem:[%s2734_s1 + $0x20] sm:$0xff]   ;;  %v2037_v10 = vld [vmem:[%s2734_s1 + $0x18] sm:$0xff]   ;;  %v131_v12 = vld [vmem:[%s2735_s0 + $0x8] sm:$0xff] }
   0x5   :  { %v147_v13 = vunpack.c.l.s8.bf16 %v131_v12  ;;  %v2039_v14 = vld [vmem:[%s2734_s1 + $0x10] sm:$0xff]   ;;  %v2040_v15 = vld [vmem:[%s2734_s1 + $0x48] sm:$0xff]   ;;  %v535_v16 = vld [vmem:[%s2736_s2] sm:$0xff]  ;;  %v149_v29 = vunpack.c.h.s8.bf16 %v131_v12 }
   0x6   :  { %v537_v17 = vld [vmem:[%s2736_s2 + $0x10] sm:$0xff]  ;;  %569 = vperm.xlu0 %2026, %v535_v16   ;;  %v536_v18 = vld [vmem:[%s2736_s2 + $0x8] sm:$0xff]  ;;  %v538_v19 = vld [vmem:[%s2736_s2 + $0x18] sm:$0xff] }
   0x7   :  { %1683 = vmatpush3.bf16.msra.mxu0 %v2031_v4  ;;  %306 = vmatprep.mubr.bf16.mxu0 %v147_v13  ;;  %v2041_v20 = vld [vmem:[%s2734_s1 + $0x8] sm:$0xff]   ;;  %v2042_v21 = vld [vmem:[%s2734_s1 + $0x40] sm:$0xff]   ;;  %v541_v27 = vld [vmem:[%s2736_s2 + $0x30] sm:$0xff] }
   0x8   :  { %1684 = vmatprep.subr.bf16.mxu0 %v2032_v5  ;;  %579 = vperm.xlu1 %2027, %v537_v17   ;;  %v539_v22 = vld [vmem:[%s2736_s2 + $0x20] sm:$0xff]  ;;  %v540_v23 = vld [vmem:[%s2736_s2 + $0x28] sm:$0xff]  ;;  %v542_v28 = vld [vmem:[%s2736_s2 + $0x38] sm:$0xff] }
   0x9   :  { %v2043_v24 = vld [vmem:[%s2734_s1] sm:$0xff]   ;;  %v544_v31 = vld [vmem:[%s2736_s2 + $0x48] sm:$0xff]  ;;  %v133_v32 = vld [vmem:[%s2735_s0 + $0x18] sm:$0xff] }
   0xa   :  { %574 = vperm.xlu0 %2026, %v536_v18   ;;  %v130_v25 = vld [vmem:[%s2735_s0] sm:$0xff]  ;;  %v545_v34 = vld [vmem:[%s2736_s2 + $0x50] sm:$0xff]  ;;  %v546_v35 = vld [vmem:[%s2736_s2 + $0x58] sm:$0xff]  ;;  %v151_v36 = vunpack.c.l.s8.bf16 %v133_v32  ;;  %v153_v43 = vunpack.c.h.s8.bf16 %v133_v32 }
   0xb   :  { %1685 = vmatpush3.bf16.msra.mxu0 %v2033_v6  ;;  %v146_v26 = vunpack.c.l.s8.bf16 %v130_v25  ;;  %v543_v30 = vld [vmem:[%s2736_s2 + $0x40] sm:$0xff]  ;;  %v148_v33 = vunpack.c.h.s8.bf16 %v130_v25  ;;  %v548_v38 = vld [vmem:[%s2736_s2 + $0x68] sm:$0xff]  ;;  %v132_v39 = vld [vmem:[%s2735_s0 + $0x10] sm:$0xff] }
   0xc   :  { %1686 = vmatprep.subr.bf16.mxu0 %v2034_v7  ;;  %584 = vperm.xlu1 %2027, %v538_v19   ;;  %v547_v37 = vld [vmem:[%s2736_s2 + $0x60] sm:$0xff]  ;;  %v150_v40 = vunpack.c.l.s8.bf16 %v132_v39  ;;  %v549_v41 = vld [vmem:[%s2736_s2 + $0x70] sm:$0xff]  ;;  %v550_v42 = vld [vmem:[%s2736_s2 + $0x78] sm:$0xff]  ;;  %v152_v47 = vunpack.c.h.s8.bf16 %v132_v39 }
   0xd   :  { %v551_v44 = vld [vmem:[%s2736_s2 + $0x80] sm:$0xff]  ;;  %v552_v45 = vld [vmem:[%s2736_s2 + $0x88] sm:$0xff]  ;;  %v553_v48 = vld [vmem:[%s2736_s2 + $0x90] sm:$0xff] }
   0xe   :  { %589 = vperm.xlu0 %2026, %v539_v22   ;;  %v135_v46 = vld [vmem:[%s2735_s0 + $0x28] sm:$0xff]  ;;  %v554_v49 = vld [vmem:[%s2736_s2 + $0x98] sm:$0xff]  ;;  %v555_v51 = vld [vmem:[%s2736_s2 + $0xa0] sm:$0xff] }
   0xf   :  { %1687 = vmatpush3.bf16.msra.mxu0 %v2035_v8  ;;  %v155_v50 = vunpack.c.l.s8.bf16 %v135_v46  ;;  %v556_v52 = vld [vmem:[%s2736_s2 + $0xa8] sm:$0xff]  ;;  %v134_v53 = vld [vmem:[%s2735_s0 + $0x20] sm:$0xff]  ;;  %v557_v55 = vld [vmem:[%s2736_s2 + $0xb0] sm:$0xff]  ;;  %v157_v57 = vunpack.c.h.s8.bf16 %v135_v46 }
  0x10   :  { %1688 = vmatprep.subr.bf16.mxu0 %v2036_v9  ;;  %594 = vperm.xlu1 %2027, %v540_v23   ;;  %v154_v54 = vunpack.c.l.s8.bf16 %v134_v53  ;;  %v558_v56 = vld [vmem:[%s2736_s2 + $0xb8] sm:$0xff]  ;;  %v559_v58 = vld [vmem:[%s2736_s2 + $0xc0] sm:$0xff]  ;;  %v560_v59 = vld [vmem:[%s2736_s2 + $0xc8] sm:$0xff]  ;;  %v156_v61 = vunpack.c.h.s8.bf16 %v134_v53 }
  0x11   :  { %v137_v60 = vld [vmem:[%s2735_s0 + $0x38] sm:$0xff]  ;;  %v561_v62 = vld [vmem:[%s2736_s2 + $0xd0] sm:$0xff]  ;;  %v563_v1 = vld [vmem:[%s2736_s2 + $0xe0] sm:$0xff] }
  0x12   :  { %599 = vperm.xlu0 %2026, %v541_v27   ;;  %v562_v63 = vld [vmem:[%s2736_s2 + $0xd8] sm:$0xff]  ;;  %v159_v0 = vunpack.c.l.s8.bf16 %v137_v60  ;;  %v564_v2 = vld [vmem:[%s2736_s2 + $0xe8] sm:$0xff]  ;;  %v136_v3 = vld [vmem:[%s2735_s0 + $0x30] sm:$0xff]  ;;  %v161_v7 = vunpack.c.h.s8.bf16 %v137_v60 }
  0x13   :  { %1689 = vmatpush3.bf16.msra.mxu0 %v2037_v10  ;;  %v158_v4 = vunpack.c.l.s8.bf16 %v136_v3  ;;  %v565_v5 = vld [vmem:[%s2736_s2 + $0xf0] sm:$0xff]  ;;  %v566_v6 = vld [vmem:[%s2736_s2 + $0xf8] sm:$0xff]  ;;  %v139_v8 = vld [vmem:[%s2735_s0 + $0x48] sm:$0xff]  ;;  %v160_v9 = vunpack.c.h.s8.bf16 %v136_v3 }
  0x14   :  { %1690 = vmatprep.subr.bf16.mxu0 %v2038_v11  ;;  %604 = vperm.xlu1 %2027, %v542_v28   ;;  %v163_v10 = vunpack.c.l.s8.bf16 %v139_v8  ;;  %v138_v11 = vld [vmem:[%s2735_s0 + $0x40] sm:$0xff]  ;;  %v165_v13 = vunpack.c.h.s8.bf16 %v139_v8  ;;  %v766_v17 = vld [vmem:[%s2737_s3 + $0x38] sm:$0xff]  ;;  %v765_v19 = vld [vmem:[%s2737_s3 + $0x30] sm:$0xff] }
  0x15   :  { %v162_v12 = vunpack.c.l.s8.bf16 %v138_v11  ;;  %v164_v16 = vunpack.c.h.s8.bf16 %v138_v11  ;;  %1880 = vmatprep.subr.mxu1 %v766_v17  ;;  %v763_v22 = vld [vmem:[%s2737_s3 + $0x20] sm:$0xff]  ;;  %v760_v27 = vld [vmem:[%s2737_s3 + $0x8] sm:$0xff]  ;;  %v1141_v11 = vld [vmem:[%s2738_s5 + $0x70] sm:$0xff] }
  0x16   :  { %609 = vperm.xlu0 %2026, %v543_v30   ;;  %1881 = vmatpush3.msra.mxu1 %v766_v17  ;;  %v143_v28 = vld [vmem:[%s2735_s0 + $0x68] sm:$0xff]  ;;  %v142_v32 = vld [vmem:[%s2735_s0 + $0x60] sm:$0xff] }
  0x17   :  { %1691 = vmatpush3.bf16.msra.mxu0 %v2039_v14  ;;  %v2045_v14 = vmov 0.0   ;;  %1882 = vmatprep.subr.mxu1 %v765_v19 }
  0x18   :  { %1692 = vmatprep.subr.bf16.mxu0 %v2040_v15  ;;  %614 = vperm.xlu1 %2027, %v544_v31   ;;  %29 = vst.msk [vmem:[#allocation2] sm:$0xff] %vm28_vm0, %v2045_v14  ;;  %30 = vst.msk [vmem:[#allocation2 + $0x8] sm:$0xff] %vm28_vm0, %v2045_v14  ;;  %v141_v15 = vld [vmem:[%s2735_s0 + $0x58] sm:$0xff]  ;;  %v171_v31 = vunpack.c.l.s8.bf16 %v143_v28 }
  0x19   :  { %31 = vst.msk [vmem:[#allocation2 + $0x10] sm:$0xff] %vm28_vm0, %v2045_v14  ;;  %32 = vst.msk [vmem:[#allocation2 + $0x18] sm:$0xff] %vm28_vm0, %v2045_v14  ;;  %v167_v18 = vunpack.c.l.s8.bf16 %v141_v15  ;;  %1883 = vmatpush3.msra.mxu1 %v765_v19  ;;  %v169_v25 = vunpack.c.h.s8.bf16 %v141_v15 }
  0x1a   :  { %619 = vperm.xlu0 %2026, %v545_v34   ;;  %33 = vst.msk [vmem:[#allocation2 + $0x20] sm:$0xff] %vm28_vm0, %v2045_v14  ;;  %34 = vst.msk [vmem:[#allocation2 + $0x28] sm:$0xff] %vm28_vm0, %v2045_v14  ;;  %v173_v34 = vunpack.c.h.s8.bf16 %v143_v28 }
  0x1b   :  { %1693 = vmatpush3.bf16.msra.mxu0 %v2041_v20  ;;  %35 = vst.msk [vmem:[#allocation2 + $0x30] sm:$0xff] %vm28_vm0, %v2045_v14  ;;  %36 = vst.msk [vmem:[#allocation2 + $0x38] sm:$0xff] %vm28_vm0, %v2045_v14  ;;  %v764_v20 = vld [vmem:[%s2737_s3 + $0x28] sm:$0xff] }
  0x1c   :  { %1694 = vmatprep.subr.bf16.mxu0 %v2042_v21  ;;  %624 = vperm.xlu1 %2027, %v546_v35   ;;  %37 = vst.msk [vmem:[#allocation2 + $0x40] sm:$0xff] %vm28_vm0, %v2045_v14  ;;  %38 = vst.msk [vmem:[#allocation2 + $0x48] sm:$0xff] %vm28_vm0, %v2045_v14  ;;  %v140_v21 = vld [vmem:[%s2735_s0 + $0x50] sm:$0xff]  ;;  %v145_v35 = vld [vmem:[%s2735_s0 + $0x78] sm:$0xff] }
  0x1d   :  { %39 = vst.msk [vmem:[#allocation2 + $0x50] sm:$0xff] %vm28_vm0, %v2045_v14  ;;  %40 = vst.msk [vmem:[#allocation2 + $0x58] sm:$0xff] %vm28_vm0, %v2045_v14  ;;  %1884 = vmatprep.subr.mxu1 %v764_v20  ;;  %v166_v23 = vunpack.c.l.s8.bf16 %v140_v21  ;;  %v168_v30 = vunpack.c.h.s8.bf16 %v140_v21 }
  0x1e   :  { %629 = vperm.xlu0 %2026, %v547_v37   ;;  %41 = vst.msk [vmem:[#allocation2 + $0x60] sm:$0xff] %vm28_vm0, %v2045_v14  ;;  %42 = vst.msk [vmem:[#allocation2 + $0x68] sm:$0xff] %vm28_vm0, %v2045_v14  ;;  %1885 = vmatpush3.msra.mxu1 %v764_v20  ;;  %v175_v37 = vunpack.c.l.s8.bf16 %v145_v35  ;;  %v1139_v20 = vld [vmem:[%s2738_s5 + $0x60] sm:$0xff] }
  0x1f   :  { %1695 = vmatpush3.bf16.msra.mxu0 %v2043_v24  ;;  %43 = vst.msk [vmem:[#allocation2 + $0x70] sm:$0xff] %vm28_vm0, %v2045_v14  ;;  %44 = vst.msk [vmem:[#allocation2 + $0x78] sm:$0xff] %vm28_vm0, %v2045_v14  ;;  %1886 = vmatprep.subr.mxu1 %v763_v22  ;;  %v762_v24 = vld [vmem:[%s2737_s3 + $0x18] sm:$0xff] }
  0x20   :  { %634 = vperm.xlu1 %2027, %v548_v38   ;;  %45 = vst.msk [vmem:[#allocation2 + $0x80] sm:$0xff] %vm28_vm0, %v2045_v14  ;;  %46 = vst.msk [vmem:[#allocation2 + $0x88] sm:$0xff] %vm28_vm0, %v2045_v14  ;;  %1887 = vmatpush3.msra.mxu1 %v763_v22  ;;  %v144_v38 = vld [vmem:[%s2735_s0 + $0x70] sm:$0xff]  ;;  %v100_v53 = vld [vmem:[#allocation2 + $0x10] sm:$0xff] }
  0x21   :  { %47 = vst.msk [vmem:[#allocation2 + $0x90] sm:$0xff] %vm28_vm0, %v2045_v14  ;;  %48 = vst.msk [vmem:[#allocation2 + $0x98] sm:$0xff] %vm28_vm0, %v2045_v14  ;;  %1888 = vmatprep.subr.mxu1 %v762_v24  ;;  %v174_v39 = vunpack.c.l.s8.bf16 %v144_v38 }
  0x22   :  { %307 = vmatmul.mubr.bf16.vlgmr.msra.gmra.mxu0 %v146_v26  ;;  %639 = vperm.xlu0 %2026, %v549_v41   ;;  %49 = vst.msk [vmem:[#allocation2 + $0xa0] sm:$0xff] %vm28_vm0, %v2045_v14  ;;  %50 = vst.msk [vmem:[#allocation2 + $0xa8] sm:$0xff] %vm28_vm0, %v2045_v14  ;;  %v761_v26 = vld [vmem:[%s2737_s3 + $0x10] sm:$0xff]  ;;  %v176_v41 = vunpack.c.h.s8.bf16 %v144_v38 }
  0x23   :  { %314 = vmatprep.mubr.bf16.mxu0 %v149_v29  ;;  %51 = vst.msk [vmem:[#allocation2 + $0xb0] sm:$0xff] %vm28_vm0, %v2045_v14  ;;  %52 = vst.msk [vmem:[#allocation2 + $0xb8] sm:$0xff] %vm28_vm0, %v2045_v14  ;;  %1889 = vmatpush3.msra.mxu1 %v762_v24  ;;  %v759_v29 = vld [vmem:[%s2737_s3] sm:$0xff]  ;;  %v104_v24 = vld [vmem:[#allocation2 + $0x30] sm:$0xff] }
  0x24   :  { %644 = vperm.xlu1 %2027, %v550_v42   ;;  %53 = vst.msk [vmem:[#allocation2 + $0xc0] sm:$0xff] %vm28_vm0, %v2045_v14  ;;  %54 = vst.msk [vmem:[#allocation2 + $0xc8] sm:$0xff] %vm28_vm0, %v2045_v14  ;;  %1890 = vmatprep.subr.mxu1 %v761_v26 }
  0x25   :  { %55 = vst.msk [vmem:[#allocation2 + $0xd0] sm:$0xff] %vm28_vm0, %v2045_v14  ;;  %56 = vst.msk [vmem:[#allocation2 + $0xd8] sm:$0xff] %vm28_vm0, %v2045_v14  ;;  %1891 = vmatpush3.msra.mxu1 %v761_v26  ;;  %v1138_v26 = vld [vmem:[%s2738_s5 + $0x58] sm:$0xff] }
  0x26   :  { %649 = vperm.xlu0 %2026, %v551_v44   ;;  %57 = vst.msk [vmem:[#allocation2 + $0xe0] sm:$0xff] %vm28_vm0, %v2045_v14  ;;  %58 = vst.msk [vmem:[#allocation2 + $0xe8] sm:$0xff] %vm28_vm0, %v2045_v14  ;;  %1892 = vmatprep.subr.mxu1 %v760_v27 }
  0x27   :  { %59 = vst.msk [vmem:[#allocation2 + $0xf0] sm:$0xff] %vm28_vm0, %v2045_v14  ;;  %60 = vst.msk [vmem:[#allocation2 + $0xf8] sm:$0xff] %vm28_vm0, %v2045_v14  ;;  %1893 = vmatpush3.msra.mxu1 %v760_v27  ;;  %v103_v14 = vld [vmem:[#allocation2 + $0x28] sm:$0xff] }
  0x28   :  { %654 = vperm.xlu1 %2027, %v552_v45   ;;  %1894 = vmatprep.subr.mxu1 %v759_v29 }
  0x29   :  { %1895 = vmatpush3.msra.mxu1 %v759_v29 }
  0x2a   :  { %315 = vmatmul.mubr.bf16.gmra.mxu0 %v148_v33  ;;  %659 = vperm.xlu0 %2026, %v553_v48   ;;  %v170_v33 = vunpack.c.l.s8.bf16 %v142_v32  ;;  %v99_v48 = vld [vmem:[#allocation2 + $0x8] sm:$0xff] }
  0x2b   :  { %322 = vmatprep.mubr.bf16.mxu0 %v151_v36  ;;  %v172_v36 = vunpack.c.h.s8.bf16 %v142_v32 }
  0x2c   :  { %664 = vperm.xlu1 %2027, %v554_v49  }
  0x2e   :  { %669 = vperm.xlu0 %2026, %v555_v51  }
  0x30   :  { %674 = vperm.xlu1 %2027, %v556_v52  }
  0x32   :  { %323 = vmatmul.mubr.bf16.gmra.mxu0 %v150_v40  ;;  %679 = vperm.xlu0 %2026, %v557_v55   ;;  %v177_v40 = vunpack.c.h.s8.bf16 %v145_v35 }
  0x33   :  { %330 = vmatprep.mubr.bf16.mxu0 %v153_v43  ;;  %v98_v43 = vld [vmem:[#allocation2] sm:$0xff] }
  0x34   :  { %684 = vperm.xlu1 %2027, %v558_v56  }
  0x36   :  { %689 = vperm.xlu0 %2026, %v559_v58  }
  0x38   :  { %694 = vperm.xlu1 %2027, %v560_v59   ;;  %v101_v59 = vld [vmem:[#allocation2 + $0x18] sm:$0xff] }
  0x3a   :  { %331 = vmatmul.mubr.bf16.gmra.mxu0 %v152_v47  ;;  %699 = vperm.xlu0 %2026, %v561_v62   ;;  %v1142_v62 = vld [vmem:[%s2738_s5 + $0x78] sm:$0xff] }
  0x3b   :  { %338 = vmatprep.mubr.bf16.mxu0 %v155_v50  ;;  %1944 = vmatprep.subr.mxu1 %v1142_v62 }
  0x3c   :  { %704 = vperm.xlu1 %2027, %v562_v63  }
  0x3e   :  { %709 = vperm.xlu0 %2026, %v563_v1  }
  0x40   :  { %714 = vperm.xlu1 %2027, %v564_v2  }
  0x42   :  { %339 = vmatmul.mubr.bf16.gmra.mxu0 %v154_v54  ;;  %719 = vperm.xlu0 %2026, %v565_v5   ;;  %v102_v5 = vld [vmem:[#allocation2 + $0x20] sm:$0xff] }
  0x43   :  { %346 = vmatprep.mubr.bf16.mxu0 %v157_v57 }
  0x44   :  { %724 = vperm.xlu1 %2027, %v566_v6  }
  0x4a   :  { %347 = vmatmul.mubr.bf16.gmra.mxu0 %v156_v61 }
  0x4b   :  { %354 = vmatprep.mubr.bf16.mxu0 %v159_v0 }
  0x52   :  { %355 = vmatmul.mubr.bf16.gmra.mxu0 %v158_v4 }
  0x53   :  { %362 = vmatprep.mubr.bf16.mxu0 %v161_v7 }
  0x5a   :  { %363 = vmatmul.mubr.bf16.gmra.mxu0 %v160_v9 }
  0x5b   :  { %370 = vmatprep.mubr.bf16.mxu0 %v163_v10 }
  0x62   :  { %371 = vmatmul.mubr.bf16.gmra.mxu0 %v162_v12 }
  0x63   :  { %378 = vmatprep.mubr.bf16.mxu0 %v165_v13 }
  0x6a   :  { %379 = vmatmul.mubr.bf16.gmra.mxu0 %v164_v16  ;;  %v1140_v16 = vld [vmem:[%s2738_s5 + $0x68] sm:$0xff] }
  0x6b   :  { %386 = vmatprep.mubr.bf16.mxu0 %v167_v18 }
  0x72   :  { %387 = vmatmul.mubr.bf16.gmra.mxu0 %v166_v23 }
  0x73   :  { %394 = vmatprep.mubr.bf16.mxu0 %v169_v25 }
  0x7a   :  { %395 = vmatmul.mubr.bf16.gmra.mxu0 %v168_v30  ;;  %v1137_v30 = vld [vmem:[%s2738_s5 + $0x50] sm:$0xff] }
  0x7b   :  { %402 = vmatprep.mubr.bf16.mxu0 %v171_v31 }
  0x81   :  { %v2330_v55 = vpop.permute.xlu0 %569 }
  0x82   :  { %403 = vmatmul.mubr.bf16.gmra.mxu0 %v170_v33 }
  0x83   :  { %410 = vmatprep.mubr.bf16.mxu0 %v173_v34  ;;  %v2343_v9 = vpop.permute.xlu1 %579  ;;  %v105_v34 = vld [vmem:[#allocation2 + $0x38] sm:$0xff] }
  0x85   :  { %v2338_v2 = vpop.permute.xlu0 %574 }
  0x87   :  { %v2358_v22 = vpop.permute.xlu1 %584 }
  0x89   :  { %v2369_v32 = vpop.permute.xlu0 %589 }
  0x8a   :  { %411 = vmatmul.mubr.bf16.gmra.mxu0 %v172_v36  ;;  %v1136_v36 = vld [vmem:[%s2738_s5 + $0x48] sm:$0xff] }
  0x8b   :  { %418 = vmatprep.mubr.bf16.mxu0 %v175_v37 }
  0x92   :  { %419 = vmatmul.mubr.bf16.gmra.mxu0 %v174_v39 }
  0x93   :  { %426 = vmatprep.mubr.bf16.mxu0 %v177_v40  ;;  %v1135_v40 = vld [vmem:[%s2738_s5 + $0x40] sm:$0xff] }
  0x9a   :  { %427 = vmatmul.mubr.bf16.gmra.mxu0 %v176_v41 }
  0xe2   :  { %v1696_v42 = vpop.f32.mrf.mxu0 }
  0xe4   :  { %v1697_v44 = vpop.f32.mrf.mxu0 }
  0xe5   :  { %v1698_v45 = vadd.f32 %v1697_v44, %v1696_v42  ;;  %v2380_v42 = vpop.permute.xlu1 %594  ;;  %v106_v44 = vld [vmem:[#allocation2 + $0x40] sm:$0xff] }
  0xe6   :  { %v1699_v46 = vpop.f32.mrf.mxu0 }
  0xe7   :  { %v435_v47 = vadd.f32 %v1698_v45, %v98_v43 }
  0xe8   :  { %v1700_v49 = vpop.f32.mrf.mxu0 }
  0xe9   :  { %468 = vst.msk [vmem:[#allocation2] sm:$0xff] %vm28_vm0, %v435_v47  ;;  %v1701_v50 = vadd.f32 %v1700_v49, %v1699_v46  ;;  %v1134_v46 = vld [vmem:[%s2738_s5 + $0x38] sm:$0xff] }
  0xea   :  { %v1702_v51 = vpop.f32.mrf.mxu0 }
  0xeb   :  { %v436_v52 = vadd.f32 %v1701_v50, %v99_v48  ;;  %v1133_v50 = vld [vmem:[%s2738_s5 + $0x30] sm:$0xff] }
  0xec   :  { %v1703_v54 = vpop.f32.mrf.mxu0 }
  0xed   :  { %469 = vst.msk [vmem:[#allocation2 + $0x8] sm:$0xff] %vm28_vm0, %v436_v52  ;;  %v1704_v56 = vadd.f32 %v1703_v54, %v1702_v51  ;;  %v2391_v52 = vpop.permute.xlu0 %599 }
  0xee   :  { %v1705_v57 = vpop.f32.mrf.mxu0 }
  0xef   :  { %v437_v58 = vadd.f32 %v1704_v56, %v100_v53  ;;  %v107_v53 = vld [vmem:[#allocation2 + $0x48] sm:$0xff] }
  0xf0   :  { %v1706_v60 = vpop.f32.mrf.mxu0  ;;  %v503_v61 = vld [vmem:[#allocation2] sm:$0xff] }
  0xf1   :  { %470 = vst.msk [vmem:[#allocation2 + $0x10] sm:$0xff] %vm28_vm0, %v437_v58  ;;  %v1707_v63 = vadd.f32 %v1706_v60, %v1705_v57  ;;  %v727_v0 = vmul.f32 %v2330_v55, %v503_v61  ;;  %v1132_v57 = vld [vmem:[%s2738_s5 + $0x28] sm:$0xff]  ;;  %v1131_v61 = vld [vmem:[%s2738_s5 + $0x20] sm:$0xff] }
  0xf2   :  { %v1708_v1 = vpop.f32.mrf.mxu0 }
  0xf3   :  { %v438_v3 = vadd.f32 %v1707_v63, %v101_v59  ;;  %1896 = vmatprep.mubr.msk.f32.mxu1 %vm28_vm0, %v727_v0  ;;  %v2402_v63 = vpop.permute.xlu1 %604  ;;  %v108_v0 = vld [vmem:[#allocation2 + $0x50] sm:$0xff] }
  0xf4   :  { %v504_v4 = vld [vmem:[#allocation2 + $0x8] sm:$0xff]  ;;  %v1709_v6 = vpop.f32.mrf.mxu0 }
  0xf5   :  { %471 = vst.msk [vmem:[#allocation2 + $0x18] sm:$0xff] %vm28_vm0, %v438_v3  ;;  %v728_v7 = vmul.f32 %v2338_v2, %v504_v4  ;;  %v1710_v8 = vadd.f32 %v1709_v6, %v1708_v1 }
  0xf6   :  { %v1711_v10 = vpop.f32.mrf.mxu0 }
  0xf7   :  { %v439_v12 = vadd.f32 %v1710_v8, %v102_v5  ;;  %1897 = vmatmul.mubr.msk.f32.vlgmr.msra.gmra.mxu1 %vm28_vm0, %v728_v7  ;;  %v2407_v8 = vpop.permute.xlu0 %609 }
  0xf8   :  { %v505_v13 = vld [vmem:[#allocation2 + $0x10] sm:$0xff]  ;;  %v1712_v15 = vpop.f32.mrf.mxu0  ;;  %1945 = vmatpush3.msra.mxu1 %v1142_v62 }
  0xf9   :  { %v729_v17 = vmul.f32 %v2343_v9, %v505_v13  ;;  %472 = vst.msk [vmem:[#allocation2 + $0x20] sm:$0xff] %vm28_vm0, %v439_v12  ;;  %v1713_v18 = vadd.f32 %v1712_v15, %v1711_v10  ;;  %1946 = vmatprep.subr.mxu1 %v1141_v11  ;;  %v109_v10 = vld [vmem:[#allocation2 + $0x58] sm:$0xff] }
  0xfa   :  { %v1714_v19 = vpop.f32.mrf.mxu0  ;;  %1947 = vmatpush3.msra.mxu1 %v1141_v11 }
  0xfb   :  { %v440_v21 = vadd.f32 %v1713_v18, %v103_v14  ;;  %1899 = vmatprep.mubr.msk.f32.mxu1 %vm28_vm0, %v729_v17  ;;  %1948 = vmatprep.subr.mxu1 %v1140_v16  ;;  %v2412_v17 = vpop.permute.xlu1 %614  ;;  %v110_v18 = vld [vmem:[#allocation2 + $0x60] sm:$0xff] }
  0xfc   :  { %v506_v23 = vld [vmem:[#allocation2 + $0x18] sm:$0xff]  ;;  %v1715_v25 = vpop.f32.mrf.mxu0  ;;  %1949 = vmatpush3.msra.mxu1 %v1140_v16 }
  0xfd   :  { %v730_v27 = vmul.f32 %v2358_v22, %v506_v23  ;;  %473 = vst.msk [vmem:[#allocation2 + $0x28] sm:$0xff] %vm28_vm0, %v440_v21  ;;  %v1716_v28 = vadd.f32 %v1715_v25, %v1714_v19  ;;  %1950 = vmatprep.subr.mxu1 %v1139_v20 }
  0xfe   :  { %v1717_v29 = vpop.f32.mrf.mxu0  ;;  %1951 = vmatpush3.msra.mxu1 %v1139_v20 }
  0xff   :  { %v441_v31 = vadd.f32 %v1716_v28, %v104_v24  ;;  %1900 = vmatmul.mubr.msk.f32.gmra.mxu1 %vm28_vm0, %v730_v27  ;;  %1952 = vmatprep.subr.mxu1 %v1138_v26  ;;  %v111_v27 = vld [vmem:[#allocation2 + $0x68] sm:$0xff] }
 0x100   :  { %v507_v33 = vld [vmem:[#allocation2 + $0x20] sm:$0xff]  ;;  %v1718_v35 = vpop.f32.mrf.mxu0  ;;  %1953 = vmatpush3.msra.mxu1 %v1138_v26  ;;  %v2417_v26 = vpop.permute.xlu0 %619 }
 0x101   :  { %v731_v37 = vmul.f32 %v2369_v32, %v507_v33  ;;  %474 = vst.msk [vmem:[#allocation2 + $0x30] sm:$0xff] %vm28_vm0, %v441_v31  ;;  %v1719_v38 = vadd.f32 %v1718_v35, %v1717_v29  ;;  %1954 = vmatprep.subr.mxu1 %v1137_v30  ;;  %v2422_v35 = vpop.permute.xlu1 %624 }
 0x102   :  { %v1720_v39 = vpop.f32.mrf.mxu0  ;;  %1955 = vmatpush3.msra.mxu1 %v1137_v30 }
 0x103   :  { %v442_v41 = vadd.f32 %v1719_v38, %v105_v34  ;;  %1902 = vmatprep.mubr.msk.f32.mxu1 %vm28_vm0, %v731_v37  ;;  %1956 = vmatprep.subr.mxu1 %v1136_v36 }
 0x104   :  { %v508_v43 = vld [vmem:[#allocation2 + $0x28] sm:$0xff]  ;;  %v1721_v45 = vpop.f32.mrf.mxu0  ;;  %1957 = vmatpush3.msra.mxu1 %v1136_v36  ;;  %v112_v36 = vld [vmem:[#allocation2 + $0x70] sm:$0xff] }
 0x105   :  { %v732_v47 = vmul.f32 %v2380_v42, %v508_v43  ;;  %475 = vst.msk [vmem:[#allocation2 + $0x38] sm:$0xff] %vm28_vm0, %v442_v41  ;;  %v1722_v48 = vadd.f32 %v1721_v45, %v1720_v39  ;;  %1958 = vmatprep.subr.mxu1 %v1135_v40  ;;  %v113_v45 = vld [vmem:[#allocation2 + $0x78] sm:$0xff] }
 0x106   :  { %v1723_v49 = vpop.f32.mrf.mxu0  ;;  %1959 = vmatpush3.msra.mxu1 %v1135_v40 }
 0x107   :  { %v443_v51 = vadd.f32 %v1722_v48, %v106_v44  ;;  %1903 = vmatmul.mubr.msk.f32.gmra.mxu1 %vm28_vm0, %v732_v47  ;;  %1960 = vmatprep.subr.mxu1 %v1134_v46  ;;  %v2427_v44 = vpop.permute.xlu0 %629 }
 0x108   :  { %v1724_v54 = vpop.f32.mrf.mxu0  ;;  %v509_v56 = vld [vmem:[#allocation2 + $0x30] sm:$0xff]  ;;  %1961 = vmatpush3.msra.mxu1 %v1134_v46 }
 0x109   :  { %476 = vst.msk [vmem:[#allocation2 + $0x40] sm:$0xff] %vm28_vm0, %v443_v51  ;;  %v1725_v58 = vadd.f32 %v1724_v54, %v1723_v49  ;;  %v733_v59 = vmul.f32 %v2391_v52, %v509_v56  ;;  %1962 = vmatprep.subr.mxu1 %v1133_v50  ;;  %v114_v54 = vld [vmem:[#allocation2 + $0x80] sm:$0xff] }
 0x10a   :  { %v1726_v60 = vpop.f32.mrf.mxu0  ;;  %1963 = vmatpush3.msra.mxu1 %v1133_v50 }
 0x10b   :  { %v444_v62 = vadd.f32 %v1725_v58, %v107_v53  ;;  %1905 = vmatprep.mubr.msk.f32.mxu1 %vm28_vm0, %v733_v59  ;;  %1964 = vmatprep.subr.mxu1 %v1132_v57  ;;  %v2432_v53 = vpop.permute.xlu1 %634 }
 0x10c   :  { %v1727_v1 = vpop.f32.mrf.mxu0  ;;  %v510_v3 = vld [vmem:[#allocation2 + $0x38] sm:$0xff]  ;;  %1965 = vmatpush3.msra.mxu1 %v1132_v57 }
 0x10d   :  { %477 = vst.msk [vmem:[#allocation2 + $0x48] sm:$0xff] %vm28_vm0, %v444_v62  ;;  %v1728_v4 = vadd.f32 %v1727_v1, %v1726_v60  ;;  %v734_v5 = vmul.f32 %v2402_v63, %v510_v3  ;;  %1966 = vmatprep.subr.mxu1 %v1131_v61  ;;  %v2437_v62 = vpop.permute.xlu0 %639 }
 0x10e   :  { %v1729_v6 = vpop.f32.mrf.mxu0  ;;  %1967 = vmatpush3.msra.mxu1 %v1131_v61 }
 0x10f   :  { %v445_v7 = vadd.f32 %v1728_v4, %v108_v0  ;;  %1906 = vmatmul.mubr.msk.f32.gmra.mxu1 %vm28_vm0, %v734_v5  ;;  %v115_v0 = vld [vmem:[#allocation2 + $0x88] sm:$0xff] }
 0x110   :  { %v1730_v11 = vpop.f32.mrf.mxu0  ;;  %v511_v12 = vld [vmem:[#allocation2 + $0x40] sm:$0xff] }
 0x111   :  { %478 = vst.msk [vmem:[#allocation2 + $0x50] sm:$0xff] %vm28_vm0, %v445_v7  ;;  %v1731_v13 = vadd.f32 %v1730_v11, %v1729_v6  ;;  %v735_v14 = vmul.f32 %v2407_v8, %v511_v12  ;;  %v116_v11 = vld [vmem:[#allocation2 + $0x90] sm:$0xff] }
 0x112   :  { %v1732_v15 = vpop.f32.mrf.mxu0 }
 0x113   :  { %v446_v16 = vadd.f32 %v1731_v13, %v109_v10  ;;  %1908 = vmatprep.mubr.msk.f32.mxu1 %vm28_vm0, %v735_v14  ;;  %v2442_v10 = vpop.permute.xlu1 %644 }
 0x114   :  { %v1733_v19 = vpop.f32.mrf.mxu0  ;;  %v512_v20 = vld [vmem:[#allocation2 + $0x48] sm:$0xff] }
 0x115   :  { %479 = vst.msk [vmem:[#allocation2 + $0x58] sm:$0xff] %vm28_vm0, %v446_v16  ;;  %v1734_v21 = vadd.f32 %v1733_v19, %v1732_v15  ;;  %v736_v23 = vmul.f32 %v2412_v17, %v512_v20  ;;  %v2447_v19 = vpop.permute.xlu0 %649  ;;  %v117_v20 = vld [vmem:[#allocation2 + $0x98] sm:$0xff] }
 0x116   :  { %v1735_v24 = vpop.f32.mrf.mxu0 }
 0x117   :  { %v447_v25 = vadd.f32 %v1734_v21, %v110_v18  ;;  %1909 = vmatmul.mubr.msk.f32.gmra.mxu1 %vm28_vm0, %v736_v23 }
 0x118   :  { %v1736_v28 = vpop.f32.mrf.mxu0  ;;  %v513_v29 = vld [vmem:[#allocation2 + $0x50] sm:$0xff] }
 0x119   :  { %480 = vst.msk [vmem:[#allocation2 + $0x60] sm:$0xff] %vm28_vm0, %v447_v25  ;;  %v1737_v30 = vadd.f32 %v1736_v28, %v1735_v24  ;;  %v737_v31 = vmul.f32 %v2417_v26, %v513_v29  ;;  %v2452_v29 = vpop.permute.xlu1 %654 }
 0x11a   :  { %v1738_v33 = vpop.f32.mrf.mxu0 }
 0x11b   :  { %v448_v34 = vadd.f32 %v1737_v30, %v111_v27  ;;  %1911 = vmatprep.mubr.msk.f32.mxu1 %vm28_vm0, %v737_v31  ;;  %v118_v30 = vld [vmem:[#allocation2 + $0xa0] sm:$0xff] }
 0x11c   :  { %v1739_v37 = vpop.f32.mrf.mxu0  ;;  %v514_v38 = vld [vmem:[#allocation2 + $0x58] sm:$0xff] }
 0x11d   :  { %481 = vst.msk [vmem:[#allocation2 + $0x68] sm:$0xff] %vm28_vm0, %v448_v34  ;;  %v1740_v39 = vadd.f32 %v1739_v37, %v1738_v33  ;;  %v738_v40 = vmul.f32 %v2422_v35, %v514_v38  ;;  %v1130_v38 = vld [vmem:[%s2738_s5 + $0x18] sm:$0xff] }
 0x11e   :  { %v1741_v41 = vpop.f32.mrf.mxu0  ;;  %1968 = vmatprep.subr.mxu1 %v1130_v38 }
 0x11f   :  { %v449_v43 = vadd.f32 %v1740_v39, %v112_v36  ;;  %1912 = vmatmul.mubr.msk.f32.gmra.mxu1 %vm28_vm0, %v738_v40  ;;  %v2460_v40 = vpop.permute.xlu0 %659 }
 0x120   :  { %v1742_v46 = vpop.f32.mrf.mxu0  ;;  %v515_v47 = vld [vmem:[#allocation2 + $0x60] sm:$0xff]  ;;  %1969 = vmatpush3.msra.mxu1 %v1130_v38  ;;  %v124_v38 = vld [vmem:[#allocation2 + $0xd0] sm:$0xff] }
 0x121   :  { %482 = vst.msk [vmem:[#allocation2 + $0x70] sm:$0xff] %vm28_vm0, %v449_v43  ;;  %v1743_v48 = vadd.f32 %v1742_v46, %v1741_v41  ;;  %v739_v49 = vmul.f32 %v2427_v44, %v515_v47  ;;  %v119_v41 = vld [vmem:[#allocation2 + $0xa8] sm:$0xff]  ;;  %v1129_v46 = vld [vmem:[%s2738_s5 + $0x10] sm:$0xff] }
 0x122   :  { %v1744_v50 = vpop.f32.mrf.mxu0  ;;  %1970 = vmatprep.subr.mxu1 %v1129_v46 }
 0x123   :  { %v450_v51 = vadd.f32 %v1743_v48, %v113_v45  ;;  %1914 = vmatprep.mubr.msk.f32.mxu1 %vm28_vm0, %v739_v49  ;;  %1971 = vmatpush3.msra.mxu1 %v1129_v46 }
 0x124   :  { %v1745_v56 = vpop.f32.mrf.mxu0  ;;  %v516_v57 = vld [vmem:[#allocation2 + $0x68] sm:$0xff] }
 0x125   :  { %483 = vst.msk [vmem:[#allocation2 + $0x78] sm:$0xff] %vm28_vm0, %v450_v51  ;;  %v1746_v58 = vadd.f32 %v1745_v56, %v1744_v50  ;;  %v740_v59 = vmul.f32 %v2432_v53, %v516_v57  ;;  %v1128_v50 = vld [vmem:[%s2738_s5 + $0x8] sm:$0xff] }
 0x126   :  { %v1747_v60 = vpop.f32.mrf.mxu0  ;;  %1972 = vmatprep.subr.mxu1 %v1128_v50  ;;  %v120_v56 = vld [vmem:[#allocation2 + $0xb0] sm:$0xff] }
 0x127   :  { %v451_v61 = vadd.f32 %v1746_v58, %v114_v54  ;;  %1915 = vmatmul.mubr.msk.f32.gmra.mxu1 %vm28_vm0, %v740_v59  ;;  %v2471_v54 = vpop.permute.xlu1 %664  ;;  %v1127_v59 = vld [vmem:[%s2738_s5] sm:$0xff] }
 0x128   :  { %v1748_v1 = vpop.f32.mrf.mxu0  ;;  %v517_v3 = vld [vmem:[#allocation2 + $0x70] sm:$0xff]  ;;  %1973 = vmatpush3.msra.mxu1 %v1128_v50 }
 0x129   :  { %484 = vst.msk [vmem:[#allocation2 + $0x80] sm:$0xff] %vm28_vm0, %v451_v61  ;;  %v1749_v4 = vadd.f32 %v1748_v1, %v1747_v60  ;;  %v741_v5 = vmul.f32 %v2437_v62, %v517_v3  ;;  %1974 = vmatprep.subr.mxu1 %v1127_v59  ;;  %v2479_v3 = vpop.permute.xlu0 %669 }
 0x12a   :  { %v1750_v6 = vpop.f32.mrf.mxu0  ;;  %1975 = vmatpush3.msra.mxu1 %v1127_v59 }
 0x12b   :  { %v452_v7 = vadd.f32 %v1749_v4, %v115_v0  ;;  %1917 = vmatprep.mubr.msk.f32.mxu1 %vm28_vm0, %v741_v5  ;;  %v121_v4 = vld [vmem:[#allocation2 + $0xb8] sm:$0xff] }
 0x12c   :  { %v1751_v12 = vpop.f32.mrf.mxu0  ;;  %v518_v13 = vld [vmem:[#allocation2 + $0x78] sm:$0xff] }
 0x12d   :  { %485 = vst.msk [vmem:[#allocation2 + $0x88] sm:$0xff] %vm28_vm0, %v452_v7  ;;  %v1752_v14 = vadd.f32 %v1751_v12, %v1750_v6  ;;  %v742_v15 = vmul.f32 %v2442_v10, %v518_v13 }
 0x12e   :  { %v1753_v16 = vpop.f32.mrf.mxu0 }
 0x12f   :  { %v453_v18 = vadd.f32 %v1752_v14, %v116_v11  ;;  %1918 = vmatmul.mubr.msk.f32.gmra.mxu1 %vm28_vm0, %v742_v15  ;;  %v2484_v14 = vpop.permute.xlu1 %674  ;;  %v122_v15 = vld [vmem:[#allocation2 + $0xc0] sm:$0xff] }
 0x130   :  { %v1754_v21 = vpop.f32.mrf.mxu0  ;;  %v519_v23 = vld [vmem:[#allocation2 + $0x80] sm:$0xff] }
 0x131   :  { %486 = vst.msk [vmem:[#allocation2 + $0x90] sm:$0xff] %vm28_vm0, %v453_v18  ;;  %v1755_v24 = vadd.f32 %v1754_v21, %v1753_v16  ;;  %v743_v25 = vmul.f32 %v2447_v19, %v519_v23 }
 0x132   :  { %v1756_v27 = vpop.f32.mrf.mxu0 }
 0x133   :  { %v454_v28 = vadd.f32 %v1755_v24, %v117_v20  ;;  %1920 = vmatprep.mubr.msk.f32.mxu1 %vm28_vm0, %v743_v25  ;;  %v2489_v25 = vpop.permute.xlu0 %679 }
 0x134   :  { %v1757_v31 = vpop.f32.mrf.mxu0  ;;  %v520_v33 = vld [vmem:[#allocation2 + $0x88] sm:$0xff] }
 0x135   :  { %487 = vst.msk [vmem:[#allocation2 + $0x98] sm:$0xff] %vm28_vm0, %v454_v28  ;;  %v1758_v34 = vadd.f32 %v1757_v31, %v1756_v27  ;;  %v744_v36 = vmul.f32 %v2452_v29, %v520_v33  ;;  %v123_v27 = vld [vmem:[#allocation2 + $0xc8] sm:$0xff] }
 0x136   :  { %v1759_v37 = vpop.f32.mrf.mxu0 }
 0x137   :  { %v455_v39 = vadd.f32 %v1758_v34, %v118_v30  ;;  %1921 = vmatmul.mubr.msk.f32.gmra.mxu1 %vm28_vm0, %v744_v36 }
 0x138   :  { %v1760_v43 = vpop.f32.mrf.mxu0  ;;  %v521_v45 = vld [vmem:[#allocation2 + $0x90] sm:$0xff] }
 0x139   :  { %488 = vst.msk [vmem:[#allocation2 + $0xa0] sm:$0xff] %vm28_vm0, %v455_v39  ;;  %v1761_v47 = vadd.f32 %v1760_v43, %v1759_v37  ;;  %v745_v48 = vmul.f32 %v2460_v40, %v521_v45  ;;  %v2494_v37 = vpop.permute.xlu1 %684 }
 0x13a   :  { %v1762_v49 = vpop.f32.mrf.mxu0 }
 0x13b   :  { %v456_v51 = vadd.f32 %v1761_v47, %v119_v41  ;;  %1923 = vmatprep.mubr.msk.f32.mxu1 %vm28_vm0, %v745_v48  ;;  %v2499_v48 = vpop.permute.xlu0 %689 }
 0x13c   :  { %v1763_v57 = vpop.f32.mrf.mxu0  ;;  %v522_v58 = vld [vmem:[#allocation2 + $0x98] sm:$0xff] }
 0x13d   :  { %489 = vst.msk [vmem:[#allocation2 + $0xa8] sm:$0xff] %vm28_vm0, %v456_v51  ;;  %v1764_v60 = vadd.f32 %v1763_v57, %v1762_v49  ;;  %v746_v61 = vmul.f32 %v2471_v54, %v522_v58  ;;  %v125_v49 = vld [vmem:[#allocation2 + $0xd8] sm:$0xff] }
 0x13e   :  { %v1765_v0 = vpop.f32.mrf.mxu0 }
 0x13f   :  { %v457_v1 = vadd.f32 %v1764_v60, %v120_v56  ;;  %1924 = vmatmul.mubr.msk.f32.gmra.mxu1 %vm28_vm0, %v746_v61  ;;  %v2504_v60 = vpop.permute.xlu1 %694  ;;  %v126_v61 = vld [vmem:[#allocation2 + $0xe0] sm:$0xff] }
 0x140   :  { %v1766_v5 = vpop.f32.mrf.mxu0  ;;  %v523_v6 = vld [vmem:[#allocation2 + $0xa0] sm:$0xff] }
 0x141   :  { %490 = vst.msk [vmem:[#allocation2 + $0xb0] sm:$0xff] %vm28_vm0, %v457_v1  ;;  %v1767_v7 = vadd.f32 %v1766_v5, %v1765_v0  ;;  %v747_v11 = vmul.f32 %v2479_v3, %v523_v6 }
 0x142   :  { %v1768_v12 = vpop.f32.mrf.mxu0 }
 0x143   :  { %v458_v13 = vadd.f32 %v1767_v7, %v121_v4  ;;  %1926 = vmatprep.mubr.msk.f32.mxu1 %vm28_vm0, %v747_v11  ;;  %v2509_v11 = vpop.permute.xlu0 %699 }
 0x144   :  { %v1769_v16 = vpop.f32.mrf.mxu0  ;;  %v524_v18 = vld [vmem:[#allocation2 + $0xa8] sm:$0xff] }
 0x145   :  { %491 = vst.msk [vmem:[#allocation2 + $0xb8] sm:$0xff] %vm28_vm0, %v458_v13  ;;  %v1770_v20 = vadd.f32 %v1769_v16, %v1768_v12  ;;  %v748_v21 = vmul.f32 %v2484_v14, %v524_v18  ;;  %v127_v12 = vld [vmem:[#allocation2 + $0xe8] sm:$0xff] }
 0x146   :  { %v1771_v23 = vpop.f32.mrf.mxu0 }
 0x147   :  { %v459_v24 = vadd.f32 %v1770_v20, %v122_v15  ;;  %1927 = vmatmul.mubr.msk.f32.gmra.mxu1 %vm28_vm0, %v748_v21 }
 0x148   :  { %v1772_v28 = vpop.f32.mrf.mxu0  ;;  %v525_v30 = vld [vmem:[#allocation2 + $0xb0] sm:$0xff] }
 0x149   :  { %492 = vst.msk [vmem:[#allocation2 + $0xc0] sm:$0xff] %vm28_vm0, %v459_v24  ;;  %v1773_v31 = vadd.f32 %v1772_v28, %v1771_v23  ;;  %v749_v33 = vmul.f32 %v2489_v25, %v525_v30  ;;  %v2514_v23 = vpop.permute.xlu1 %704  ;;  %v128_v24 = vld [vmem:[#allocation2 + $0xf0] sm:$0xff] }
 0x14a   :  { %v1774_v34 = vpop.f32.mrf.mxu0 }
 0x14b   :  { %v460_v36 = vadd.f32 %v1773_v31, %v123_v27  ;;  %1929 = vmatprep.mubr.msk.f32.mxu1 %vm28_vm0, %v749_v33 }
 0x14c   :  { %v1775_v39 = vpop.f32.mrf.mxu0  ;;  %v526_v41 = vld [vmem:[#allocation2 + $0xb8] sm:$0xff] }
 0x14d   :  { %493 = vst.msk [vmem:[#allocation2 + $0xc8] sm:$0xff] %vm28_vm0, %v460_v36  ;;  %v1776_v43 = vadd.f32 %v1775_v39, %v1774_v34  ;;  %v750_v45 = vmul.f32 %v2494_v37, %v526_v41  ;;  %v2519_v36 = vpop.permute.xlu0 %709 }
 0x14e   :  { %v1777_v46 = vpop.f32.mrf.mxu0 }
 0x14f   :  { %v461_v47 = vadd.f32 %v1776_v43, %v124_v38  ;;  %1930 = vmatmul.mubr.msk.f32.gmra.mxu1 %vm28_vm0, %v750_v45  ;;  %v129_v38 = vld [vmem:[#allocation2 + $0xf8] sm:$0xff] }
 0x150   :  { %v1778_v50 = vpop.f32.mrf.mxu0  ;;  %v527_v51 = vld [vmem:[#allocation2 + $0xc0] sm:$0xff] }
 0x151   :  { %494 = vst.msk [vmem:[#allocation2 + $0xd0] sm:$0xff] %vm28_vm0, %v461_v47  ;;  %v1779_v56 = vadd.f32 %v1778_v50, %v1777_v46  ;;  %v751_v57 = vmul.f32 %v2499_v48, %v527_v51  ;;  %v2524_v47 = vpop.permute.xlu1 %714  ;;  %v2529_v51 = vpop.permute.xlu0 %719 }
 0x152   :  { %v1780_v58 = vpop.f32.mrf.mxu0 }
 0x153   :  { %v462_v59 = vadd.f32 %v1779_v56, %v125_v49  ;;  %1932 = vmatprep.mubr.msk.f32.mxu1 %vm28_vm0, %v751_v57 }
 0x154   :  { %v1781_v0 = vpop.f32.mrf.mxu0  ;;  %v528_v1 = vld [vmem:[#allocation2 + $0xc8] sm:$0xff] }
 0x155   :  { %495 = vst.msk [vmem:[#allocation2 + $0xd8] sm:$0xff] %vm28_vm0, %v462_v59  ;;  %v1782_v4 = vadd.f32 %v1781_v0, %v1780_v58  ;;  %v752_v5 = vmul.f32 %v2504_v60, %v528_v1  ;;  %v2533_v58 = vpop.permute.xlu1 %724  ;;  %v2540_v0 = vld [vmem:[%s2739_s4] ss:$0 sm:$0xff] }
 0x156   :  { %v1783_v6 = vpop.f32.mrf.mxu0 }
 0x157   :  { %v463_v7 = vadd.f32 %v1782_v4, %v126_v61  ;;  %1933 = vmatmul.mubr.msk.f32.gmra.mxu1 %vm28_vm0, %v752_v5 }
 0x158   :  { %v1784_v13 = vpop.f32.mrf.mxu0  ;;  %v529_v15 = vld [vmem:[#allocation2 + $0xd0] sm:$0xff] }
 0x159   :  { %496 = vst.msk [vmem:[#allocation2 + $0xe0] sm:$0xff] %vm28_vm0, %v463_v7  ;;  %v1785_v16 = vadd.f32 %v1784_v13, %v1783_v6  ;;  %v753_v18 = vmul.f32 %v2509_v11, %v529_v15 }
 0x15a   :  { %v1786_v20 = vpop.f32.mrf.mxu0 }
 0x15b   :  { %v464_v21 = vadd.f32 %v1785_v16, %v127_v12  ;;  %1935 = vmatprep.mubr.msk.f32.mxu1 %vm28_vm0, %v753_v18 }
 0x15c   :  { %v1787_v27 = vpop.f32.mrf.mxu0  ;;  %v530_v28 = vld [vmem:[#allocation2 + $0xd8] sm:$0xff] }
 0x15d   :  { %497 = vst.msk [vmem:[#allocation2 + $0xe8] sm:$0xff] %vm28_vm0, %v464_v21  ;;  %v1788_v30 = vadd.f32 %v1787_v27, %v1786_v20  ;;  %v754_v31 = vmul.f32 %v2514_v23, %v530_v28 }
 0x15e   :  { %v1789_v33 = vpop.f32.mrf.mxu0 }
 0x15f   :  { %v465_v34 = vadd.f32 %v1788_v30, %v128_v24  ;;  %1936 = vmatmul.mubr.msk.f32.gmra.mxu1 %vm28_vm0, %v754_v31 }
 0x160   :  { %v1790_v39 = vpop.f32.mrf.mxu0  ;;  %v531_v41 = vld [vmem:[#allocation2 + $0xe0] sm:$0xff] }
 0x161   :  { %498 = vst.msk [vmem:[#allocation2 + $0xf0] sm:$0xff] %vm28_vm0, %v465_v34  ;;  %v1791_v43 = vadd.f32 %v1790_v39, %v1789_v33  ;;  %v755_v45 = vmul.f32 %v2519_v36, %v531_v41 }
 0x163   :  { %v466_v46 = vadd.f32 %v1791_v43, %v129_v38  ;;  %1938 = vmatprep.mubr.msk.f32.mxu1 %vm28_vm0, %v755_v45 }
 0x164   :  { %v532_v49 = vld [vmem:[#allocation2 + $0xe8] sm:$0xff] }
 0x165   :  { %499 = vst.msk [vmem:[#allocation2 + $0xf8] sm:$0xff] %vm28_vm0, %v466_v46  ;;  %v756_v50 = vmul.f32 %v2524_v47, %v532_v49 }
 0x167   :  { %1939 = vmatmul.mubr.msk.f32.gmra.mxu1 %vm28_vm0, %v756_v50 }
 0x168   :  { %v533_v56 = vld [vmem:[#allocation2 + $0xf0] sm:$0xff] }
 0x169   :  { %v757_v57 = vmul.f32 %v2529_v51, %v533_v56 }
 0x16b   :  { %1941 = vmatprep.mubr.msk.f32.mxu1 %vm28_vm0, %v757_v57 }
 0x16c   :  { %v534_v59 = vld [vmem:[#allocation2 + $0xf8] sm:$0xff] }
 0x16d   :  { %v758_v61 = vmul.f32 %v2533_v58, %v534_v59 }
 0x16f   :  { %1942 = vmatmul.mubr.msk.f32.gmra.mxu1 %vm28_vm0, %v758_v61 }
 0x1b7   :  { %v1898_v1 = vpop.f32.mrf.mxu1 }
 0x1b8   :  { %v942_v4 = vadd.f32 %v1898_v1, %v2540_v0 }
 0x1b9   :  { %v936_v5 = vpop.f32.mrf.mxu1 }
 0x1ba   :  { %v937_v6 = vadd.f32 %v2540_v0, %v936_v5  ;;  %v1096_v12 = vmax.f32 %v942_v4, 0.0 }
 0x1bc   :  { %v1095_v7 = vmax.f32 %v937_v6, 0.0 }
 0x1be   :  { %1976 = vmatprep.mubr.f32.mxu1 %v1095_v7 }
 0x1bf   :  { %v1901_v13 = vpop.f32.mrf.mxu1  ;;  %1977 = vmatmul.mubr.f32.vlgmr.msra.gmra.mxu1 %v1096_v12 }
 0x1c0   :  { %v952_v15 = vadd.f32 %v1901_v13, %v2540_v0 }
 0x1c1   :  { %v946_v16 = vpop.f32.mrf.mxu1 }
 0x1c2   :  { %v947_v18 = vadd.f32 %v2540_v0, %v946_v16  ;;  %v1098_v21 = vmax.f32 %v952_v15, 0.0 }
 0x1c4   :  { %v1097_v20 = vmax.f32 %v947_v18, 0.0 }
 0x1c6   :  { %1979 = vmatprep.mubr.f32.mxu1 %v1097_v20 }
 0x1c7   :  { %v1904_v24 = vpop.f32.mrf.mxu1  ;;  %1980 = vmatmul.mubr.f32.gmra.mxu1 %v1098_v21 }
 0x1c8   :  { %v962_v27 = vadd.f32 %v1904_v24, %v2540_v0 }
 0x1c9   :  { %v956_v28 = vpop.f32.mrf.mxu1 }
 0x1ca   :  { %v957_v30 = vadd.f32 %v2540_v0, %v956_v28  ;;  %v1100_v33 = vmax.f32 %v962_v27, 0.0 }
 0x1cc   :  { %v1099_v31 = vmax.f32 %v957_v30, 0.0 }
 0x1ce   :  { %1982 = vmatprep.mubr.f32.mxu1 %v1099_v31 }
 0x1cf   :  { %v1907_v34 = vpop.f32.mrf.mxu1  ;;  %1983 = vmatmul.mubr.f32.gmra.mxu1 %v1100_v33 }
 0x1d0   :  { %v972_v38 = vadd.f32 %v1907_v34, %v2540_v0 }
 0x1d1   :  { %v966_v39 = vpop.f32.mrf.mxu1 }
 0x1d2   :  { %v967_v41 = vadd.f32 %v2540_v0, %v966_v39  ;;  %v1102_v45 = vmax.f32 %v972_v38, 0.0 }
 0x1d4   :  { %v1101_v43 = vmax.f32 %v967_v41, 0.0 }
 0x1d6   :  { %1985 = vmatprep.mubr.f32.mxu1 %v1101_v43 }
 0x1d7   :  { %v1910_v46 = vpop.f32.mrf.mxu1  ;;  %1986 = vmatmul.mubr.f32.gmra.mxu1 %v1102_v45 }
 0x1d8   :  { %v982_v49 = vadd.f32 %v1910_v46, %v2540_v0 }
 0x1d9   :  { %v976_v50 = vpop.f32.mrf.mxu1 }
 0x1da   :  { %v977_v56 = vadd.f32 %v2540_v0, %v976_v50  ;;  %v1104_v59 = vmax.f32 %v982_v49, 0.0 }
 0x1dc   :  { %v1103_v57 = vmax.f32 %v977_v56, 0.0 }
 0x1de   :  { %1988 = vmatprep.mubr.f32.mxu1 %v1103_v57 }
 0x1df   :  { %v1913_v61 = vpop.f32.mrf.mxu1  ;;  %1989 = vmatmul.mubr.f32.gmra.mxu1 %v1104_v59 }
 0x1e0   :  { %v992_v1 = vadd.f32 %v1913_v61, %v2540_v0 }
 0x1e1   :  { %v986_v4 = vpop.f32.mrf.mxu1 }
 0x1e2   :  { %v987_v5 = vadd.f32 %v2540_v0, %v986_v4  ;;  %v1106_v7 = vmax.f32 %v992_v1, 0.0 }
 0x1e4   :  { %v1105_v6 = vmax.f32 %v987_v5, 0.0 }
 0x1e6   :  { %1991 = vmatprep.mubr.f32.mxu1 %v1105_v6 }
 0x1e7   :  { %v1916_v12 = vpop.f32.mrf.mxu1  ;;  %1992 = vmatmul.mubr.f32.gmra.mxu1 %v1106_v7 }
 0x1e8   :  { %v1002_v13 = vadd.f32 %v1916_v12, %v2540_v0 }
 0x1e9   :  { %v996_v15 = vpop.f32.mrf.mxu1 }
 0x1ea   :  { %v997_v16 = vadd.f32 %v2540_v0, %v996_v15  ;;  %v1108_v20 = vmax.f32 %v1002_v13, 0.0 }
 0x1ec   :  { %v1107_v18 = vmax.f32 %v997_v16, 0.0 }
 0x1ee   :  { %1994 = vmatprep.mubr.f32.mxu1 %v1107_v18 }
 0x1ef   :  { %v1919_v21 = vpop.f32.mrf.mxu1  ;;  %1995 = vmatmul.mubr.f32.gmra.mxu1 %v1108_v20 }
 0x1f0   :  { %v1012_v24 = vadd.f32 %v1919_v21, %v2540_v0 }
 0x1f1   :  { %v1006_v27 = vpop.f32.mrf.mxu1 }
 0x1f2   :  { %v1007_v28 = vadd.f32 %v2540_v0, %v1006_v27  ;;  %v1110_v31 = vmax.f32 %v1012_v24, 0.0 }
 0x1f4   :  { %v1109_v30 = vmax.f32 %v1007_v28, 0.0 }
 0x1f6   :  { %1997 = vmatprep.mubr.f32.mxu1 %v1109_v30 }
 0x1f7   :  { %v1922_v33 = vpop.f32.mrf.mxu1  ;;  %1998 = vmatmul.mubr.f32.gmra.mxu1 %v1110_v31 }
 0x1f8   :  { %v1022_v34 = vadd.f32 %v1922_v33, %v2540_v0 }
 0x1f9   :  { %v1016_v38 = vpop.f32.mrf.mxu1 }
 0x1fa   :  { %v1017_v39 = vadd.f32 %v2540_v0, %v1016_v38  ;;  %v1112_v43 = vmax.f32 %v1022_v34, 0.0 }
 0x1fc   :  { %v1111_v41 = vmax.f32 %v1017_v39, 0.0 }
 0x1fe   :  { %2000 = vmatprep.mubr.f32.mxu1 %v1111_v41 }
 0x1ff   :  { %v1925_v45 = vpop.f32.mrf.mxu1  ;;  %2001 = vmatmul.mubr.f32.gmra.mxu1 %v1112_v43 }
 0x200   :  { %v1032_v46 = vadd.f32 %v1925_v45, %v2540_v0 }
 0x201   :  { %v1026_v49 = vpop.f32.mrf.mxu1 }
 0x202   :  { %v1027_v50 = vadd.f32 %v2540_v0, %v1026_v49  ;;  %v1114_v57 = vmax.f32 %v1032_v46, 0.0 }
 0x204   :  { %v1113_v56 = vmax.f32 %v1027_v50, 0.0 }
 0x206   :  { %2003 = vmatprep.mubr.f32.mxu1 %v1113_v56 }
 0x207   :  { %v1928_v59 = vpop.f32.mrf.mxu1  ;;  %2004 = vmatmul.mubr.f32.gmra.mxu1 %v1114_v57 }
 0x208   :  { %v1042_v61 = vadd.f32 %v1928_v59, %v2540_v0 }
 0x209   :  { %v1036_v1 = vpop.f32.mrf.mxu1 }
 0x20a   :  { %v1037_v4 = vadd.f32 %v2540_v0, %v1036_v1  ;;  %v1116_v6 = vmax.f32 %v1042_v61, 0.0 }
 0x20c   :  { %v1115_v5 = vmax.f32 %v1037_v4, 0.0 }
 0x20e   :  { %2006 = vmatprep.mubr.f32.mxu1 %v1115_v5 }
 0x20f   :  { %v1931_v7 = vpop.f32.mrf.mxu1  ;;  %2007 = vmatmul.mubr.f32.gmra.mxu1 %v1116_v6 }
 0x210   :  { %v1052_v12 = vadd.f32 %v1931_v7, %v2540_v0 }
 0x211   :  { %v1046_v13 = vpop.f32.mrf.mxu1 }
 0x212   :  { %v1047_v15 = vadd.f32 %v2540_v0, %v1046_v13  ;;  %v1118_v18 = vmax.f32 %v1052_v12, 0.0 }
 0x214   :  { %v1117_v16 = vmax.f32 %v1047_v15, 0.0 }
 0x216   :  { %2009 = vmatprep.mubr.f32.mxu1 %v1117_v16 }
 0x217   :  { %v1934_v20 = vpop.f32.mrf.mxu1  ;;  %2010 = vmatmul.mubr.f32.gmra.mxu1 %v1118_v18 }
 0x218   :  { %v1062_v21 = vadd.f32 %v1934_v20, %v2540_v0 }
 0x219   :  { %v1056_v24 = vpop.f32.mrf.mxu1 }
 0x21a   :  { %v1057_v27 = vadd.f32 %v2540_v0, %v1056_v24  ;;  %v1120_v30 = vmax.f32 %v1062_v21, 0.0 }
 0x21c   :  { %v1119_v28 = vmax.f32 %v1057_v27, 0.0 }
 0x21e   :  { %2012 = vmatprep.mubr.f32.mxu1 %v1119_v28 }
 0x21f   :  { %v1937_v31 = vpop.f32.mrf.mxu1  ;;  %2013 = vmatmul.mubr.f32.gmra.mxu1 %v1120_v30 }
 0x220   :  { %v1072_v33 = vadd.f32 %v1937_v31, %v2540_v0 }
 0x221   :  { %v1066_v34 = vpop.f32.mrf.mxu1 }
 0x222   :  { %v1067_v38 = vadd.f32 %v2540_v0, %v1066_v34  ;;  %v1122_v41 = vmax.f32 %v1072_v33, 0.0 }
 0x224   :  { %v1121_v39 = vmax.f32 %v1067_v38, 0.0 }
 0x226   :  { %2015 = vmatprep.mubr.f32.mxu1 %v1121_v39 }
 0x227   :  { %v1940_v43 = vpop.f32.mrf.mxu1  ;;  %2016 = vmatmul.mubr.f32.gmra.mxu1 %v1122_v41 }
 0x228   :  { %v1082_v45 = vadd.f32 %v1940_v43, %v2540_v0 }
 0x229   :  { %v1076_v46 = vpop.f32.mrf.mxu1 }
 0x22a   :  { %v1077_v49 = vadd.f32 %v2540_v0, %v1076_v46  ;;  %v1124_v56 = vmax.f32 %v1082_v45, 0.0 }
 0x22c   :  { %v1123_v50 = vmax.f32 %v1077_v49, 0.0 }
 0x22e   :  { %2018 = vmatprep.mubr.f32.mxu1 %v1123_v50 }
 0x22f   :  { %v1943_v57 = vpop.f32.mrf.mxu1  ;;  %2019 = vmatmul.mubr.f32.gmra.mxu1 %v1124_v56 }
 0x230   :  { %v1092_v59 = vadd.f32 %v1943_v57, %v2540_v0 }
 0x231   :  { %v1086_v61 = vpop.f32.mrf.mxu1 }
 0x232   :  { %v1087_v1 = vadd.f32 %v2540_v0, %v1086_v61  ;;  %v1126_v5 = vmax.f32 %v1092_v59, 0.0 }
 0x234   :  { %v1125_v4 = vmax.f32 %v1087_v1, 0.0 }
 0x236   :  { %2021 = vmatprep.mubr.f32.mxu1 %v1125_v4 }
 0x237   :  { %2022 = vmatmul.mubr.f32.gmra.mxu1 %v1126_v5 }
 0x27f   :  { %v1978_v6 = vpop.f32.mrf.mxu1 }
 0x280   :  { %v1369_v7 = vmul.f32 %v1978_v6, %v2338_v2 }
 0x281   :  { %v1209_v12 = vpop.f32.mrf.mxu1 }
 0x282   :  { %v1649_v13 = vpack.c.bf16 %v1369_v7, %v1369_v7  ;;  %v1368_v15 = vmul.f32 %v1209_v12, %v2330_v55 }
 0x284   :  { %1530 = vst.msk [vmem:[%s2740_s6 + $0x4] sm:$0xf] %vm1528_vm1, %v1649_v13  ;;  %v1648_v16 = vpack.c.bf16 %v1368_v15, %v1368_v15 }
 0x286   :  { %1529 = vst.msk [vmem:[%s2740_s6] sm:$0xf] %vm1528_vm1, %v1648_v16 }
 0x287   :  { %v1981_v0 = vpop.f32.mrf.mxu1 }
 0x288   :  { %v1371_v18 = vmul.f32 %v1981_v0, %v2358_v22 }
 0x289   :  { %v1219_v2 = vpop.f32.mrf.mxu1 }
 0x28a   :  { %v1651_v20 = vpack.c.bf16 %v1371_v18, %v1371_v18  ;;  %v1370_v21 = vmul.f32 %v1219_v2, %v2343_v9 }
 0x28c   :  { %1532 = vst.msk [vmem:[%s2740_s6 + $0xc] sm:$0xf] %vm1528_vm1, %v1651_v20  ;;  %v1650_v55 = vpack.c.bf16 %v1370_v21, %v1370_v21 }
 0x28e   :  { %1531 = vst.msk [vmem:[%s2740_s6 + $0x8] sm:$0xf] %vm1528_vm1, %v1650_v55 }
 0x28f   :  { %v1984_v24 = vpop.f32.mrf.mxu1 }
 0x290   :  { %v1373_v27 = vmul.f32 %v1984_v24, %v2380_v42 }
 0x291   :  { %v1229_v28 = vpop.f32.mrf.mxu1 }
 0x292   :  { %v1653_v22 = vpack.c.bf16 %v1373_v27, %v1373_v27  ;;  %v1372_v30 = vmul.f32 %v1229_v28, %v2369_v32 }
 0x294   :  { %1534 = vst.msk [vmem:[%s2740_s6 + $0x14] sm:$0xf] %vm1528_vm1, %v1653_v22  ;;  %v1652_v9 = vpack.c.bf16 %v1372_v30, %v1372_v30 }
 0x296   :  { %1533 = vst.msk [vmem:[%s2740_s6 + $0x10] sm:$0xf] %vm1528_vm1, %v1652_v9 }
 0x297   :  { %v1987_v31 = vpop.f32.mrf.mxu1 }
 0x298   :  { %v1375_v33 = vmul.f32 %v1987_v31, %v2402_v63 }
 0x299   :  { %v1239_v34 = vpop.f32.mrf.mxu1 }
 0x29a   :  { %v1655_v42 = vpack.c.bf16 %v1375_v33, %v1375_v33  ;;  %v1374_v38 = vmul.f32 %v1239_v34, %v2391_v52 }
 0x29c   :  { %1536 = vst.msk [vmem:[%s2740_s6 + $0x1c] sm:$0xf] %vm1528_vm1, %v1655_v42  ;;  %v1654_v32 = vpack.c.bf16 %v1374_v38, %v1374_v38 }
 0x29e   :  { %1535 = vst.msk [vmem:[%s2740_s6 + $0x18] sm:$0xf] %vm1528_vm1, %v1654_v32 }
 0x29f   :  { %v1990_v39 = vpop.f32.mrf.mxu1 }
 0x2a0   :  { %v1377_v41 = vmul.f32 %v1990_v39, %v2412_v17 }
 0x2a1   :  { %v1249_v43 = vpop.f32.mrf.mxu1 }
 0x2a2   :  { %v1657_v63 = vpack.c.bf16 %v1377_v41, %v1377_v41  ;;  %v1376_v45 = vmul.f32 %v1249_v43, %v2407_v8 }
 0x2a4   :  { %1538 = vst.msk [vmem:[%s2740_s6 + $0x24] sm:$0xf] %vm1528_vm1, %v1657_v63  ;;  %v1656_v52 = vpack.c.bf16 %v1376_v45, %v1376_v45 }
 0x2a6   :  { %1537 = vst.msk [vmem:[%s2740_s6 + $0x20] sm:$0xf] %vm1528_vm1, %v1656_v52 }
 0x2a7   :  { %v1993_v46 = vpop.f32.mrf.mxu1 }
 0x2a8   :  { %v1379_v49 = vmul.f32 %v1993_v46, %v2422_v35 }
 0x2a9   :  { %v1259_v50 = vpop.f32.mrf.mxu1 }
 0x2aa   :  { %v1659_v17 = vpack.c.bf16 %v1379_v49, %v1379_v49  ;;  %v1378_v56 = vmul.f32 %v1259_v50, %v2417_v26 }
 0x2ac   :  { %1540 = vst.msk [vmem:[%s2740_s6 + $0x2c] sm:$0xf] %vm1528_vm1, %v1659_v17  ;;  %v1658_v8 = vpack.c.bf16 %v1378_v56, %v1378_v56 }
 0x2ae   :  { %1539 = vst.msk [vmem:[%s2740_s6 + $0x28] sm:$0xf] %vm1528_vm1, %v1658_v8 }
 0x2af   :  { %v1996_v57 = vpop.f32.mrf.mxu1 }
 0x2b0   :  { %v1381_v59 = vmul.f32 %v1996_v57, %v2432_v53 }
 0x2b1   :  { %v1269_v61 = vpop.f32.mrf.mxu1 }
 0x2b2   :  { %v1661_v35 = vpack.c.bf16 %v1381_v59, %v1381_v59  ;;  %v1380_v1 = vmul.f32 %v1269_v61, %v2427_v44 }
 0x2b4   :  { %1542 = vst.msk [vmem:[%s2740_s6 + $0x34] sm:$0xf] %vm1528_vm1, %v1661_v35  ;;  %v1660_v26 = vpack.c.bf16 %v1380_v1, %v1380_v1 }
 0x2b6   :  { %1541 = vst.msk [vmem:[%s2740_s6 + $0x30] sm:$0xf] %vm1528_vm1, %v1660_v26 }
 0x2b7   :  { %v1999_v4 = vpop.f32.mrf.mxu1 }
 0x2b8   :  { %v1383_v5 = vmul.f32 %v1999_v4, %v2442_v10 }
 0x2b9   :  { %v1279_v6 = vpop.f32.mrf.mxu1 }
 0x2ba   :  { %v1663_v53 = vpack.c.bf16 %v1383_v5, %v1383_v5  ;;  %v1382_v7 = vmul.f32 %v1279_v6, %v2437_v62 }
 0x2bc   :  { %1544 = vst.msk [vmem:[%s2740_s6 + $0x3c] sm:$0xf] %vm1528_vm1, %v1663_v53  ;;  %v1662_v44 = vpack.c.bf16 %v1382_v7, %v1382_v7 }
 0x2be   :  { %1543 = vst.msk [vmem:[%s2740_s6 + $0x38] sm:$0xf] %vm1528_vm1, %v1662_v44 }
 0x2bf   :  { %v2002_v12 = vpop.f32.mrf.mxu1 }
 0x2c0   :  { %v1385_v13 = vmul.f32 %v2002_v12, %v2452_v29 }
 0x2c1   :  { %v1289_v15 = vpop.f32.mrf.mxu1 }
 0x2c2   :  { %v1665_v10 = vpack.c.bf16 %v1385_v13, %v1385_v13  ;;  %v1384_v16 = vmul.f32 %v1289_v15, %v2447_v19 }
 0x2c4   :  { %1546 = vst.msk [vmem:[%s2740_s6 + $0x44] sm:$0xf] %vm1528_vm1, %v1665_v10  ;;  %v1664_v62 = vpack.c.bf16 %v1384_v16, %v1384_v16 }
 0x2c6   :  { %1545 = vst.msk [vmem:[%s2740_s6 + $0x40] sm:$0xf] %vm1528_vm1, %v1664_v62 }
 0x2c7   :  { %v2005_v0 = vpop.f32.mrf.mxu1 }
 0x2c8   :  { %v1387_v18 = vmul.f32 %v2005_v0, %v2471_v54 }
 0x2c9   :  { %v1299_v2 = vpop.f32.mrf.mxu1 }
 0x2ca   :  { %v1667_v29 = vpack.c.bf16 %v1387_v18, %v1387_v18  ;;  %v1386_v20 = vmul.f32 %v1299_v2, %v2460_v40 }
 0x2cc   :  { %1548 = vst.msk [vmem:[%s2740_s6 + $0x4c] sm:$0xf] %vm1528_vm1, %v1667_v29  ;;  %v1666_v19 = vpack.c.bf16 %v1386_v20, %v1386_v20 }
 0x2ce   :  { %1547 = vst.msk [vmem:[%s2740_s6 + $0x48] sm:$0xf] %vm1528_vm1, %v1666_v19 }
 0x2cf   :  { %v2008_v21 = vpop.f32.mrf.mxu1 }
 0x2d0   :  { %v1389_v55 = vmul.f32 %v2008_v21, %v2484_v14 }
 0x2d1   :  { %v1309_v24 = vpop.f32.mrf.mxu1 }
 0x2d2   :  { %v1669_v54 = vpack.c.bf16 %v1389_v55, %v1389_v55  ;;  %v1388_v27 = vmul.f32 %v1309_v24, %v2479_v3 }
 0x2d4   :  { %1550 = vst.msk [vmem:[%s2740_s6 + $0x54] sm:$0xf] %vm1528_vm1, %v1669_v54  ;;  %v1668_v40 = vpack.c.bf16 %v1388_v27, %v1388_v27 }
 0x2d6   :  { %1549 = vst.msk [vmem:[%s2740_s6 + $0x50] sm:$0xf] %vm1528_vm1, %v1668_v40 }
 0x2d7   :  { %v2011_v28 = vpop.f32.mrf.mxu1 }
 0x2d8   :  { %v1391_v22 = vmul.f32 %v2011_v28, %v2494_v37 }
 0x2d9   :  { %v1319_v30 = vpop.f32.mrf.mxu1 }
 0x2da   :  { %v1671_v14 = vpack.c.bf16 %v1391_v22, %v1391_v22  ;;  %v1390_v9 = vmul.f32 %v1319_v30, %v2489_v25 }
 0x2dc   :  { %1552 = vst.msk [vmem:[%s2740_s6 + $0x5c] sm:$0xf] %vm1528_vm1, %v1671_v14  ;;  %v1670_v3 = vpack.c.bf16 %v1390_v9, %v1390_v9 }
 0x2de   :  { %1551 = vst.msk [vmem:[%s2740_s6 + $0x58] sm:$0xf] %vm1528_vm1, %v1670_v3 }
 0x2df   :  { %v2014_v31 = vpop.f32.mrf.mxu1 }
 0x2e0   :  { %v1393_v33 = vmul.f32 %v2014_v31, %v2504_v60 }
 0x2e1   :  { %v1329_v34 = vpop.f32.mrf.mxu1 }
 0x2e2   :  { %v1673_v37 = vpack.c.bf16 %v1393_v33, %v1393_v33  ;;  %v1392_v42 = vmul.f32 %v1329_v34, %v2499_v48 }
 0x2e4   :  { %1554 = vst.msk [vmem:[%s2740_s6 + $0x64] sm:$0xf] %vm1528_vm1, %v1673_v37  ;;  %v1672_v25 = vpack.c.bf16 %v1392_v42, %v1392_v42 }
 0x2e6   :  { %1553 = vst.msk [vmem:[%s2740_s6 + $0x60] sm:$0xf] %vm1528_vm1, %v1672_v25 }
 0x2e7   :  { %v2017_v38 = vpop.f32.mrf.mxu1 }
 0x2e8   :  { %v1395_v32 = vmul.f32 %v2017_v38, %v2514_v23 }
 0x2e9   :  { %v1339_v39 = vpop.f32.mrf.mxu1 }
 0x2ea   :  { %v1675_v60 = vpack.c.bf16 %v1395_v32, %v1395_v32  ;;  %v1394_v41 = vmul.f32 %v1339_v39, %v2509_v11 }
 0x2ec   :  { %1556 = vst.msk [vmem:[%s2740_s6 + $0x6c] sm:$0xf] %vm1528_vm1, %v1675_v60  ;;  %v1674_v48 = vpack.c.bf16 %v1394_v41, %v1394_v41 }
 0x2ee   :  { %1555 = vst.msk [vmem:[%s2740_s6 + $0x68] sm:$0xf] %vm1528_vm1, %v1674_v48 }
 0x2ef   :  { %v2020_v43 = vpop.f32.mrf.mxu1 }
 0x2f0   :  { %v1397_v63 = vmul.f32 %v2020_v43, %v2524_v47 }
 0x2f1   :  { %v1349_v45 = vpop.f32.mrf.mxu1 }
 0x2f2   :  { %v1677_v23 = vpack.c.bf16 %v1397_v63, %v1397_v63  ;;  %v1396_v52 = vmul.f32 %v1349_v45, %v2519_v36 }
 0x2f4   :  { %1558 = vst.msk [vmem:[%s2740_s6 + $0x74] sm:$0xf] %vm1528_vm1, %v1677_v23  ;;  %v1676_v11 = vpack.c.bf16 %v1396_v52, %v1396_v52 }
 0x2f6   :  { %1557 = vst.msk [vmem:[%s2740_s6 + $0x70] sm:$0xf] %vm1528_vm1, %v1676_v11 }
 0x2f7   :  { %v2023_v46 = vpop.f32.mrf.mxu1 }
 0x2f8   :  { %v1399_v49 = vmul.f32 %v2023_v46, %v2533_v58 }
 0x2f9   :  { %v1359_v50 = vpop.f32.mrf.mxu1 }
 0x2fa   :  { %v1679_v47 = vpack.c.bf16 %v1399_v49, %v1399_v49  ;;  %v1398_v17 = vmul.f32 %v1359_v50, %v2529_v51 }
 0x2fc   :  { %1560 = vst.msk [vmem:[%s2740_s6 + $0x7c] sm:$0xf] %vm1528_vm1, %v1679_v47  ;;  %v1678_v36 = vpack.c.bf16 %v1398_v17, %v1398_v17 }
 0x2fe   :  { %1559 = vst.msk [vmem:[%s2740_s6 + $0x78] sm:$0xf] %vm1528_vm1, %v1678_v36 }

</bundles_post_ra>
